<compile_context>
chip_gen: v7x
topology: tpu7x:2x2x1
jax: 0.10.0
libtpu: 0.0.40
codegen_flags: <defaults>
</compile_context>

<pallas_src>
import jax
import jax.numpy as jnp
from jax import lax
from jax.experimental import pallas as pl
from jax.experimental.pallas import tpu as pltpu


def _encoder_lstm_kernel(ids_ref,                          # SMEM (seq_len,) int32 (scalar prefetch)
                         emb_hbm, wih_ref, whh_ref, b_ref, # emb stays in HBM; rest VMEM
                         out_ref, hn_ref, cn_ref,          # VMEM outputs
                         x_sc, xp_sc, gsem):               # VMEM scratch + DMA sems
    seq_len = out_ref.shape[0]
    seq_pad, H = x_sc.shape
    vocab = emb_hbm.shape[0]

    # Zero sublane-padding rows of the gather buffer (static, usually a no-op).
    if seq_pad > seq_len:
        x_sc[pl.ds(seq_len, seq_pad - seq_len), :] = jnp.zeros(
            (seq_pad - seq_len, H), jnp.float32)

    # ---- 1. Embedding gather: DMA only the needed rows from the HBM table -----------
    # (dropout = identity in eval mode). Issue all row copies, then wait for all.
    def issue(t, carry):
        tok = jnp.clip(ids_ref[t], 0, vocab - 1)           # clamp untrusted ids (no OOB DMA)
        pltpu.make_async_copy(emb_hbm.at[pl.ds(tok, 1), :],
                              x_sc.at[pl.ds(t, 1), :],
                              gsem.at[t]).start()
        return carry

    lax.fori_loop(0, seq_len, issue, 0, unroll=True)

    def wait(t, carry):
        pltpu.make_async_copy(emb_hbm.at[pl.ds(0, 1), :],  # same-shaped descriptor; wait uses sem+size
                              x_sc.at[pl.ds(t, 1), :],
                              gsem.at[t]).wait()
        return carry

    lax.fori_loop(0, seq_len, wait, 0, unroll=True)

    # ---- 2. Time-batched input projection (no recurrent dependency) -----------------
    # x_proj[t] = x_t @ W_ih^T + (b_ih + b_hh); gate order [i, f, g, o] along 4H.
    # bf16 operands, f32 accumulation; bias add stays f32.
    xp_sc[...] = (jnp.dot(x_sc[...].astype(jnp.bfloat16), wih_ref[...],
                          preferred_element_type=jnp.float32)
                  + b_ref[...])

    # ---- 3. Sequential LSTM recurrence (only h @ W_hh^T on the critical path) -------
    def step(t, carry):
        h, c = carry                                       # carried in f32
        gates = (xp_sc[pl.ds(t, 1), :]
                 + jnp.dot(h.astype(jnp.bfloat16), whh_ref[...],
                           preferred_element_type=jnp.float32))
        i_g = jax.nn.sigmoid(gates[:, 0 * H:1 * H])
        f_g = jax.nn.sigmoid(gates[:, 1 * H:2 * H])
        g_g = jnp.tanh(gates[:, 2 * H:3 * H])
        o_g = jax.nn.sigmoid(gates[:, 3 * H:4 * H])
        c_new = f_g * c + i_g * g_g
        h_new = o_g * jnp.tanh(c_new)
        out_ref[pl.ds(t, 1), :] = h_new.astype(out_ref.dtype)
        return (h_new, c_new)

    h0 = jnp.zeros((1, H), jnp.float32)                    # hidden=None -> zero init (h0, c0)
    c0 = jnp.zeros((1, H), jnp.float32)
    h_f, c_f = lax.fori_loop(0, seq_len, step, (h0, c0), unroll=True)

    # Final states written exactly once.
    hn_ref[...] = h_f.astype(hn_ref.dtype)
    cn_ref[...] = c_f.astype(cn_ref.dtype)


def encoder_rnn_forward(token_ids, emb_table, w_ih, w_hh, b_ih, b_hh):
    """Mirrors EncoderRNN.forward(input_sequence, hidden=None) for type='LSTM', n_layers=1.

    token_ids : (1, seq_len) int32
    emb_table : (vocab, H) float32
    w_ih, w_hh: (4H, H)  PyTorch layout, gate order [i, f, g, o]
    b_ih, b_hh: (4H,)
    Returns (output, (h_n, c_n)) with shapes (seq_len, 1, H), (1, 1, H), (1, 1, H).
    """
    seq_len = token_ids.shape[1]
    vocab, H = emb_table.shape

    ids = token_ids.reshape(-1).astype(jnp.int32)

    # Weight prep (transpose to (H, 4H) for lane-dense x @ W; cast MXU operands to bf16;
    # pre-add biases in f32). For real inference, hoist this out of the per-call path.
    wih_t = jnp.transpose(w_ih).astype(jnp.bfloat16)       # (H, 4H) bf16
    whh_t = jnp.transpose(w_hh).astype(jnp.bfloat16)       # (H, 4H) bf16
    b = (b_ih + b_hh).reshape(1, 4 * H).astype(jnp.float32)

    seq_pad = ((seq_len + 7) // 8) * 8                     # sublane-aligned scratch

    out, h_n, c_n = pl.pallas_call(
        _encoder_lstm_kernel,
        out_shape=(
            jax.ShapeDtypeStruct((seq_len, H), jnp.float32),
            jax.ShapeDtypeStruct((1, H), jnp.float32),
            jax.ShapeDtypeStruct((1, H), jnp.float32),
        ),
        grid_spec=pltpu.PrefetchScalarGridSpec(
            num_scalar_prefetch=1,                         # token ids -> SMEM
            grid=(1,),                                     # recurrence runs in-kernel
            in_specs=[
                pl.BlockSpec(memory_space=pl.ANY),                   # embedding table stays in HBM
                pl.BlockSpec((H, 4 * H), lambda i, ids: (0, 0)),     # W_ih^T (bf16)
                pl.BlockSpec((H, 4 * H), lambda i, ids: (0, 0)),     # W_hh^T (bf16)
                pl.BlockSpec((1, 4 * H), lambda i, ids: (0, 0)),     # combined bias (f32)
            ],
            out_specs=[
                pl.BlockSpec((seq_len, H), lambda i, ids: (0, 0)),   # output, lane-dense
                pl.BlockSpec((1, H), lambda i, ids: (0, 0)),         # h_n
                pl.BlockSpec((1, H), lambda i, ids: (0, 0)),         # c_n
            ],
            scratch_shapes=[
                pltpu.VMEM((seq_pad, H), jnp.float32),               # gathered embedding rows
                pltpu.VMEM((seq_pad, 4 * H), jnp.float32),           # precomputed input projection
                pltpu.SemaphoreType.DMA((seq_len,)),                 # one sem per gather-row DMA
            ],
        ),
        compiler_params=pltpu.CompilerParams(
            dimension_semantics=("arbitrary",),
        ),
    )(ids, emb_table, wih_t, whh_t, b)

    return out.reshape(seq_len, 1, H), (h_n.reshape(1, 1, H), c_n.reshape(1, 1, H))


def _reference_forward(token_ids, emb_table, w_ih, w_hh, b_ih, b_hh):
    """Pure-JAX f32 reference (matches PyTorch nn.LSTM semantics, gate order [i,f,g,o])."""
    seq_len = token_ids.shape[1]
    H = emb_table.shape[1]
    x = jnp.take(emb_table, token_ids.reshape(-1), axis=0)     # (T, H)

    def step(carry, xt):
        h, c = carry
        gates = xt @ w_ih.T + b_ih + h @ w_hh.T + b_hh
        i = jax.nn.sigmoid(gates[0 * H:1 * H])
        f = jax.nn.sigmoid(gates[1 * H:2 * H])
        g = jnp.tanh(gates[2 * H:3 * H])
        o = jax.nn.sigmoid(gates[3 * H:4 * H])
        c_new = f * c + i * g
        h_new = o * jnp.tanh(c_new)
        return (h_new, c_new), h_new

    (h_f, c_f), ys = lax.scan(step, (jnp.zeros(H), jnp.zeros(H)), x)
    return ys.reshape(seq_len, 1, H), (h_f.reshape(1, 1, H), c_f.reshape(1, 1, H))


if __name__ == "__main__":
    # Small synthetic config consistent with the module (input_size=vocab, hidden_size=H).
    VOCAB = 747          # module default input_size; table lives in HBM so size is cheap
    H = 128
    SEQ_LEN = 8

    key = jax.random.PRNGKey(0)
    k_emb, k_wih, k_whh, k_bih, k_bhh, k_tok = jax.random.split(key, 6)

    bound = 1.0 / jnp.sqrt(jnp.float32(H))      # PyTorch-style uniform(-1/sqrt(H), 1/sqrt(H))
    emb_table = jax.random.normal(k_emb, (VOCAB, H), dtype=jnp.float32)
    w_ih = jax.random.uniform(k_wih, (4 * H, H), jnp.float32, -bound, bound)
    w_hh = jax.random.uniform(k_whh, (4 * H, H), jnp.float32, -bound, bound)
    b_ih = jax.random.uniform(k_bih, (4 * H,), jnp.float32, -bound, bound)
    b_hh = jax.random.uniform(k_bhh, (4 * H,), jnp.float32, -bound, bound)

    token_ids = jax.random.randint(k_tok, (1, SEQ_LEN), 0, VOCAB, dtype=jnp.int32)

    output, (h_n, c_n) = encoder_rnn_forward(token_ids, emb_table, w_ih, w_hh, b_ih, b_hh)
    jax.block_until_ready((output, h_n, c_n))

    assert output.shape == (SEQ_LEN, 1, H)
    assert h_n.shape == (1, 1, H) and c_n.shape == (1, 1, H)
    # output[-1] must equal the final hidden state h_n for a 1-layer LSTM.
    assert jnp.allclose(output[-1], h_n[0], atol=1e-5)

    # Numerical check against a pure-JAX f32 reference LSTM.
    # Kernel uses bf16 MXU operands (f32 accumulate / gates), so tolerance is ~1e-2.
    ref_out, (ref_h, ref_c) = _reference_forward(token_ids, emb_table, w_ih, w_hh, b_ih, b_hh)
    assert jnp.allclose(output, ref_out, atol=2e-2, rtol=2e-2)
    assert jnp.allclose(h_n, ref_h, atol=2e-2, rtol=2e-2)
    assert jnp.allclose(c_n, ref_c, atol=2e-2, rtol=2e-2)

    print("KERNEL_OK")
</pallas_src>

<mosaic_0001>
module attributes {stable_mosaic.version = 11 : i64} {
  func.func @_encoder_lstm_kernel(%arg0: i32, %arg1: memref<8xi32, #tpu.memory_space<smem>>, %arg2: memref<747x128xf32, #tpu.memory_space<any>>, %arg3: memref<128x512xbf16, #tpu.memory_space<vmem>>, %arg4: memref<128x512xbf16, #tpu.memory_space<vmem>>, %arg5: memref<1x512xf32, #tpu.memory_space<vmem>>, %arg6: memref<8x128xf32, #tpu.memory_space<vmem>>, %arg7: memref<1x128xf32, #tpu.memory_space<vmem>>, %arg8: memref<1x128xf32, #tpu.memory_space<vmem>>, %arg9: memref<8x128xf32, #tpu.memory_space<vmem>>, %arg10: memref<8x512xf32, #tpu.memory_space<vmem>>, %arg11: memref<8x!tpu.dma_semaphore, #tpu.memory_space<semaphore_mem>>) attributes {dimension_semantics = [#tpu.dimension_semantics<arbitrary>], iteration_bounds = array<i64: 1>, scalar_prefetch = 1 : i64, scratch_operands = 3 : i64, tpu.core_type = #tpu.core_type<tc>, window_params = [{}, {pipeline_mode = #tpu.pipeline_mode<synchronous>, transform_indices = @transform_1, window_bounds = array<i64: 128, 512>}, {pipeline_mode = #tpu.pipeline_mode<synchronous>, transform_indices = @transform_2, window_bounds = array<i64: 128, 512>}, {pipeline_mode = #tpu.pipeline_mode<synchronous>, transform_indices = @transform_3, window_bounds = array<i64: 1, 512>}, {pipeline_mode = #tpu.pipeline_mode<synchronous>, transform_indices = @transform_4, window_bounds = array<i64: 8, 128>}, {pipeline_mode = #tpu.pipeline_mode<synchronous>, transform_indices = @transform_5, window_bounds = array<i64: 1, 128>}, {pipeline_mode = #tpu.pipeline_mode<synchronous>, transform_indices = @transform_6, window_bounds = array<i64: 1, 128>}]} {
    %c0_i32 = arith.constant 0 : i32
    %0 = arith.index_cast %c0_i32 : i32 to index
    %1 = memref.load %arg1[%0] : memref<8xi32, #tpu.memory_space<smem>>
    %c0_i32_0 = arith.constant 0 : i32
    %c746_i32 = arith.constant 746 : i32
    %2 = arith.maxsi %c0_i32_0, %1 : i32
    %3 = arith.minsi %c746_i32, %2 : i32
    %c0_i32_1 = arith.constant 0 : i32
    %4 = tpu.memref_slice %arg2[%3, %c0_i32_1] : memref<747x128xf32, #tpu.memory_space<any>> -> memref<1x128xf32, #tpu.memory_space<any>>
    %c0_i32_2 = arith.constant 0 : i32
    %5 = tpu.memref_slice %arg9[%c0_i32, %c0_i32_2] : memref<8x128xf32, #tpu.memory_space<vmem>> -> memref<1x128xf32, #tpu.memory_space<vmem>>
    %6 = tpu.memref_slice %arg11[%c0_i32] : memref<8x!tpu.dma_semaphore, #tpu.memory_space<semaphore_mem>> -> memref<1x!tpu.dma_semaphore, #tpu.memory_space<semaphore_mem>>
    %7 = tpu.memref_squeeze %6 : memref<1x!tpu.dma_semaphore, #tpu.memory_space<semaphore_mem>> -> memref<!tpu.dma_semaphore, #tpu.memory_space<semaphore_mem>>
    tpu.enqueue_dma source(%4 : memref<1x128xf32, #tpu.memory_space<any>>) target(%5 : memref<1x128xf32, #tpu.memory_space<vmem>>) target_semaphore(%7 : memref<!tpu.dma_semaphore, #tpu.memory_space<semaphore_mem>>)
    %c1_i32 = arith.constant 1 : i32
    %8 = arith.index_cast %c1_i32 : i32 to index
    %9 = memref.load %arg1[%8] : memref<8xi32, #tpu.memory_space<smem>>
    %c0_i32_3 = arith.constant 0 : i32
    %c746_i32_4 = arith.constant 746 : i32
    %10 = arith.maxsi %c0_i32_3, %9 : i32
    %11 = arith.minsi %c746_i32_4, %10 : i32
    %c0_i32_5 = arith.constant 0 : i32
    %12 = tpu.memref_slice %arg2[%11, %c0_i32_5] : memref<747x128xf32, #tpu.memory_space<any>> -> memref<1x128xf32, #tpu.memory_space<any>>
    %c0_i32_6 = arith.constant 0 : i32
    %13 = tpu.memref_slice %arg9[%c1_i32, %c0_i32_6] : memref<8x128xf32, #tpu.memory_space<vmem>> -> memref<1x128xf32, #tpu.memory_space<vmem>>
    %14 = tpu.memref_slice %arg11[%c1_i32] : memref<8x!tpu.dma_semaphore, #tpu.memory_space<semaphore_mem>> -> memref<1x!tpu.dma_semaphore, #tpu.memory_space<semaphore_mem>>
    %15 = tpu.memref_squeeze %14 : memref<1x!tpu.dma_semaphore, #tpu.memory_space<semaphore_mem>> -> memref<!tpu.dma_semaphore, #tpu.memory_space<semaphore_mem>>
    tpu.enqueue_dma source(%12 : memref<1x128xf32, #tpu.memory_space<any>>) target(%13 : memref<1x128xf32, #tpu.memory_space<vmem>>) target_semaphore(%15 : memref<!tpu.dma_semaphore, #tpu.memory_space<semaphore_mem>>)
    %c2_i32 = arith.constant 2 : i32
    %16 = arith.index_cast %c2_i32 : i32 to index
    %17 = memref.load %arg1[%16] : memref<8xi32, #tpu.memory_space<smem>>
    %c0_i32_7 = arith.constant 0 : i32
    %c746_i32_8 = arith.constant 746 : i32
    %18 = arith.maxsi %c0_i32_7, %17 : i32
    %19 = arith.minsi %c746_i32_8, %18 : i32
    %c0_i32_9 = arith.constant 0 : i32
    %20 = tpu.memref_slice %arg2[%19, %c0_i32_9] : memref<747x128xf32, #tpu.memory_space<any>> -> memref<1x128xf32, #tpu.memory_space<any>>
    %c0_i32_10 = arith.constant 0 : i32
    %21 = tpu.memref_slice %arg9[%c2_i32, %c0_i32_10] : memref<8x128xf32, #tpu.memory_space<vmem>> -> memref<1x128xf32, #tpu.memory_space<vmem>>
    %22 = tpu.memref_slice %arg11[%c2_i32] : memref<8x!tpu.dma_semaphore, #tpu.memory_space<semaphore_mem>> -> memref<1x!tpu.dma_semaphore, #tpu.memory_space<semaphore_mem>>
    %23 = tpu.memref_squeeze %22 : memref<1x!tpu.dma_semaphore, #tpu.memory_space<semaphore_mem>> -> memref<!tpu.dma_semaphore, #tpu.memory_space<semaphore_mem>>
    tpu.enqueue_dma source(%20 : memref<1x128xf32, #tpu.memory_space<any>>) target(%21 : memref<1x128xf32, #tpu.memory_space<vmem>>) target_semaphore(%23 : memref<!tpu.dma_semaphore, #tpu.memory_space<semaphore_mem>>)
    %c3_i32 = arith.constant 3 : i32
    %24 = arith.index_cast %c3_i32 : i32 to index
    %25 = memref.load %arg1[%24] : memref<8xi32, #tpu.memory_space<smem>>
    %c0_i32_11 = arith.constant 0 : i32
    %c746_i32_12 = arith.constant 746 : i32
    %26 = arith.maxsi %c0_i32_11, %25 : i32
    %27 = arith.minsi %c746_i32_12, %26 : i32
    %c0_i32_13 = arith.constant 0 : i32
    %28 = tpu.memref_slice %arg2[%27, %c0_i32_13] : memref<747x128xf32, #tpu.memory_space<any>> -> memref<1x128xf32, #tpu.memory_space<any>>
    %c0_i32_14 = arith.constant 0 : i32
    %29 = tpu.memref_slice %arg9[%c3_i32, %c0_i32_14] : memref<8x128xf32, #tpu.memory_space<vmem>> -> memref<1x128xf32, #tpu.memory_space<vmem>>
    %30 = tpu.memref_slice %arg11[%c3_i32] : memref<8x!tpu.dma_semaphore, #tpu.memory_space<semaphore_mem>> -> memref<1x!tpu.dma_semaphore, #tpu.memory_space<semaphore_mem>>
    %31 = tpu.memref_squeeze %30 : memref<1x!tpu.dma_semaphore, #tpu.memory_space<semaphore_mem>> -> memref<!tpu.dma_semaphore, #tpu.memory_space<semaphore_mem>>
    tpu.enqueue_dma source(%28 : memref<1x128xf32, #tpu.memory_space<any>>) target(%29 : memref<1x128xf32, #tpu.memory_space<vmem>>) target_semaphore(%31 : memref<!tpu.dma_semaphore, #tpu.memory_space<semaphore_mem>>)
    %c4_i32 = arith.constant 4 : i32
    %32 = arith.index_cast %c4_i32 : i32 to index
    %33 = memref.load %arg1[%32] : memref<8xi32, #tpu.memory_space<smem>>
    %c0_i32_15 = arith.constant 0 : i32
    %c746_i32_16 = arith.constant 746 : i32
    %34 = arith.maxsi %c0_i32_15, %33 : i32
    %35 = arith.minsi %c746_i32_16, %34 : i32
    %c0_i32_17 = arith.constant 0 : i32
    %36 = tpu.memref_slice %arg2[%35, %c0_i32_17] : memref<747x128xf32, #tpu.memory_space<any>> -> memref<1x128xf32, #tpu.memory_space<any>>
    %c0_i32_18 = arith.constant 0 : i32
    %37 = tpu.memref_slice %arg9[%c4_i32, %c0_i32_18] : memref<8x128xf32, #tpu.memory_space<vmem>> -> memref<1x128xf32, #tpu.memory_space<vmem>>
    %38 = tpu.memref_slice %arg11[%c4_i32] : memref<8x!tpu.dma_semaphore, #tpu.memory_space<semaphore_mem>> -> memref<1x!tpu.dma_semaphore, #tpu.memory_space<semaphore_mem>>
    %39 = tpu.memref_squeeze %38 : memref<1x!tpu.dma_semaphore, #tpu.memory_space<semaphore_mem>> -> memref<!tpu.dma_semaphore, #tpu.memory_space<semaphore_mem>>
    tpu.enqueue_dma source(%36 : memref<1x128xf32, #tpu.memory_space<any>>) target(%37 : memref<1x128xf32, #tpu.memory_space<vmem>>) target_semaphore(%39 : memref<!tpu.dma_semaphore, #tpu.memory_space<semaphore_mem>>)
    %c5_i32 = arith.constant 5 : i32
    %40 = arith.index_cast %c5_i32 : i32 to index
    %41 = memref.load %arg1[%40] : memref<8xi32, #tpu.memory_space<smem>>
    %c0_i32_19 = arith.constant 0 : i32
    %c746_i32_20 = arith.constant 746 : i32
    %42 = arith.maxsi %c0_i32_19, %41 : i32
    %43 = arith.minsi %c746_i32_20, %42 : i32
    %c0_i32_21 = arith.constant 0 : i32
    %44 = tpu.memref_slice %arg2[%43, %c0_i32_21] : memref<747x128xf32, #tpu.memory_space<any>> -> memref<1x128xf32, #tpu.memory_space<any>>
    %c0_i32_22 = arith.constant 0 : i32
    %45 = tpu.memref_slice %arg9[%c5_i32, %c0_i32_22] : memref<8x128xf32, #tpu.memory_space<vmem>> -> memref<1x128xf32, #tpu.memory_space<vmem>>
    %46 = tpu.memref_slice %arg11[%c5_i32] : memref<8x!tpu.dma_semaphore, #tpu.memory_space<semaphore_mem>> -> memref<1x!tpu.dma_semaphore, #tpu.memory_space<semaphore_mem>>
    %47 = tpu.memref_squeeze %46 : memref<1x!tpu.dma_semaphore, #tpu.memory_space<semaphore_mem>> -> memref<!tpu.dma_semaphore, #tpu.memory_space<semaphore_mem>>
    tpu.enqueue_dma source(%44 : memref<1x128xf32, #tpu.memory_space<any>>) target(%45 : memref<1x128xf32, #tpu.memory_space<vmem>>) target_semaphore(%47 : memref<!tpu.dma_semaphore, #tpu.memory_space<semaphore_mem>>)
    %c6_i32 = arith.constant 6 : i32
    %48 = arith.index_cast %c6_i32 : i32 to index
    %49 = memref.load %arg1[%48] : memref<8xi32, #tpu.memory_space<smem>>
    %c0_i32_23 = arith.constant 0 : i32
    %c746_i32_24 = arith.constant 746 : i32
    %50 = arith.maxsi %c0_i32_23, %49 : i32
    %51 = arith.minsi %c746_i32_24, %50 : i32
    %c0_i32_25 = arith.constant 0 : i32
    %52 = tpu.memref_slice %arg2[%51, %c0_i32_25] : memref<747x128xf32, #tpu.memory_space<any>> -> memref<1x128xf32, #tpu.memory_space<any>>
    %c0_i32_26 = arith.constant 0 : i32
    %53 = tpu.memref_slice %arg9[%c6_i32, %c0_i32_26] : memref<8x128xf32, #tpu.memory_space<vmem>> -> memref<1x128xf32, #tpu.memory_space<vmem>>
    %54 = tpu.memref_slice %arg11[%c6_i32] : memref<8x!tpu.dma_semaphore, #tpu.memory_space<semaphore_mem>> -> memref<1x!tpu.dma_semaphore, #tpu.memory_space<semaphore_mem>>
    %55 = tpu.memref_squeeze %54 : memref<1x!tpu.dma_semaphore, #tpu.memory_space<semaphore_mem>> -> memref<!tpu.dma_semaphore, #tpu.memory_space<semaphore_mem>>
    tpu.enqueue_dma source(%52 : memref<1x128xf32, #tpu.memory_space<any>>) target(%53 : memref<1x128xf32, #tpu.memory_space<vmem>>) target_semaphore(%55 : memref<!tpu.dma_semaphore, #tpu.memory_space<semaphore_mem>>)
    %c7_i32 = arith.constant 7 : i32
    %56 = arith.index_cast %c7_i32 : i32 to index
    %57 = memref.load %arg1[%56] : memref<8xi32, #tpu.memory_space<smem>>
    %c0_i32_27 = arith.constant 0 : i32
    %c746_i32_28 = arith.constant 746 : i32
    %58 = arith.maxsi %c0_i32_27, %57 : i32
    %59 = arith.minsi %c746_i32_28, %58 : i32
    %c0_i32_29 = arith.constant 0 : i32
    %60 = tpu.memref_slice %arg2[%59, %c0_i32_29] : memref<747x128xf32, #tpu.memory_space<any>> -> memref<1x128xf32, #tpu.memory_space<any>>
    %c0_i32_30 = arith.constant 0 : i32
    %61 = tpu.memref_slice %arg9[%c7_i32, %c0_i32_30] : memref<8x128xf32, #tpu.memory_space<vmem>> -> memref<1x128xf32, #tpu.memory_space<vmem>>
    %62 = tpu.memref_slice %arg11[%c7_i32] : memref<8x!tpu.dma_semaphore, #tpu.memory_space<semaphore_mem>> -> memref<1x!tpu.dma_semaphore, #tpu.memory_space<semaphore_mem>>
    %63 = tpu.memref_squeeze %62 : memref<1x!tpu.dma_semaphore, #tpu.memory_space<semaphore_mem>> -> memref<!tpu.dma_semaphore, #tpu.memory_space<semaphore_mem>>
    tpu.enqueue_dma source(%60 : memref<1x128xf32, #tpu.memory_space<any>>) target(%61 : memref<1x128xf32, #tpu.memory_space<vmem>>) target_semaphore(%63 : memref<!tpu.dma_semaphore, #tpu.memory_space<semaphore_mem>>)
    %c8_i32 = arith.constant 8 : i32
    %c0_i32_31 = arith.constant 0 : i32
    %c0_i32_32 = arith.constant 0 : i32
    %c0_i32_33 = arith.constant 0 : i32
    %64 = tpu.memref_slice %arg2[%c0_i32_32, %c0_i32_33] : memref<747x128xf32, #tpu.memory_space<any>> -> memref<1x128xf32, #tpu.memory_space<any>>
    %c0_i32_34 = arith.constant 0 : i32
    %65 = tpu.memref_slice %arg9[%c0_i32_31, %c0_i32_34] : memref<8x128xf32, #tpu.memory_space<vmem>> -> memref<1x128xf32, #tpu.memory_space<vmem>>
    %66 = tpu.memref_slice %arg11[%c0_i32_31] : memref<8x!tpu.dma_semaphore, #tpu.memory_space<semaphore_mem>> -> memref<1x!tpu.dma_semaphore, #tpu.memory_space<semaphore_mem>>
    %67 = tpu.memref_squeeze %66 : memref<1x!tpu.dma_semaphore, #tpu.memory_space<semaphore_mem>> -> memref<!tpu.dma_semaphore, #tpu.memory_space<semaphore_mem>>
    tpu.wait_dma2 semaphore(%67 : memref<!tpu.dma_semaphore, #tpu.memory_space<semaphore_mem>>) src(%64 : memref<1x128xf32, #tpu.memory_space<any>>) dst(%65 : memref<1x128xf32, #tpu.memory_space<vmem>>)
    %c1_i32_35 = arith.constant 1 : i32
    %c0_i32_36 = arith.constant 0 : i32
    %c0_i32_37 = arith.constant 0 : i32
    %68 = tpu.memref_slice %arg2[%c0_i32_36, %c0_i32_37] : memref<747x128xf32, #tpu.memory_space<any>> -> memref<1x128xf32, #tpu.memory_space<any>>
    %c0_i32_38 = arith.constant 0 : i32
    %69 = tpu.memref_slice %arg9[%c1_i32_35, %c0_i32_38] : memref<8x128xf32, #tpu.memory_space<vmem>> -> memref<1x128xf32, #tpu.memory_space<vmem>>
    %70 = tpu.memref_slice %arg11[%c1_i32_35] : memref<8x!tpu.dma_semaphore, #tpu.memory_space<semaphore_mem>> -> memref<1x!tpu.dma_semaphore, #tpu.memory_space<semaphore_mem>>
    %71 = tpu.memref_squeeze %70 : memref<1x!tpu.dma_semaphore, #tpu.memory_space<semaphore_mem>> -> memref<!tpu.dma_semaphore, #tpu.memory_space<semaphore_mem>>
    tpu.wait_dma2 semaphore(%71 : memref<!tpu.dma_semaphore, #tpu.memory_space<semaphore_mem>>) src(%68 : memref<1x128xf32, #tpu.memory_space<any>>) dst(%69 : memref<1x128xf32, #tpu.memory_space<vmem>>)
    %c2_i32_39 = arith.constant 2 : i32
    %c0_i32_40 = arith.constant 0 : i32
    %c0_i32_41 = arith.constant 0 : i32
    %72 = tpu.memref_slice %arg2[%c0_i32_40, %c0_i32_41] : memref<747x128xf32, #tpu.memory_space<any>> -> memref<1x128xf32, #tpu.memory_space<any>>
    %c0_i32_42 = arith.constant 0 : i32
    %73 = tpu.memref_slice %arg9[%c2_i32_39, %c0_i32_42] : memref<8x128xf32, #tpu.memory_space<vmem>> -> memref<1x128xf32, #tpu.memory_space<vmem>>
    %74 = tpu.memref_slice %arg11[%c2_i32_39] : memref<8x!tpu.dma_semaphore, #tpu.memory_space<semaphore_mem>> -> memref<1x!tpu.dma_semaphore, #tpu.memory_space<semaphore_mem>>
    %75 = tpu.memref_squeeze %74 : memref<1x!tpu.dma_semaphore, #tpu.memory_space<semaphore_mem>> -> memref<!tpu.dma_semaphore, #tpu.memory_space<semaphore_mem>>
    tpu.wait_dma2 semaphore(%75 : memref<!tpu.dma_semaphore, #tpu.memory_space<semaphore_mem>>) src(%72 : memref<1x128xf32, #tpu.memory_space<any>>) dst(%73 : memref<1x128xf32, #tpu.memory_space<vmem>>)
    %c3_i32_43 = arith.constant 3 : i32
    %c0_i32_44 = arith.constant 0 : i32
    %c0_i32_45 = arith.constant 0 : i32
    %76 = tpu.memref_slice %arg2[%c0_i32_44, %c0_i32_45] : memref<747x128xf32, #tpu.memory_space<any>> -> memref<1x128xf32, #tpu.memory_space<any>>
    %c0_i32_46 = arith.constant 0 : i32
    %77 = tpu.memref_slice %arg9[%c3_i32_43, %c0_i32_46] : memref<8x128xf32, #tpu.memory_space<vmem>> -> memref<1x128xf32, #tpu.memory_space<vmem>>
    %78 = tpu.memref_slice %arg11[%c3_i32_43] : memref<8x!tpu.dma_semaphore, #tpu.memory_space<semaphore_mem>> -> memref<1x!tpu.dma_semaphore, #tpu.memory_space<semaphore_mem>>
    %79 = tpu.memref_squeeze %78 : memref<1x!tpu.dma_semaphore, #tpu.memory_space<semaphore_mem>> -> memref<!tpu.dma_semaphore, #tpu.memory_space<semaphore_mem>>
    tpu.wait_dma2 semaphore(%79 : memref<!tpu.dma_semaphore, #tpu.memory_space<semaphore_mem>>) src(%76 : memref<1x128xf32, #tpu.memory_space<any>>) dst(%77 : memref<1x128xf32, #tpu.memory_space<vmem>>)
    %c4_i32_47 = arith.constant 4 : i32
    %c0_i32_48 = arith.constant 0 : i32
    %c0_i32_49 = arith.constant 0 : i32
    %80 = tpu.memref_slice %arg2[%c0_i32_48, %c0_i32_49] : memref<747x128xf32, #tpu.memory_space<any>> -> memref<1x128xf32, #tpu.memory_space<any>>
    %c0_i32_50 = arith.constant 0 : i32
    %81 = tpu.memref_slice %arg9[%c4_i32_47, %c0_i32_50] : memref<8x128xf32, #tpu.memory_space<vmem>> -> memref<1x128xf32, #tpu.memory_space<vmem>>
    %82 = tpu.memref_slice %arg11[%c4_i32_47] : memref<8x!tpu.dma_semaphore, #tpu.memory_space<semaphore_mem>> -> memref<1x!tpu.dma_semaphore, #tpu.memory_space<semaphore_mem>>
    %83 = tpu.memref_squeeze %82 : memref<1x!tpu.dma_semaphore, #tpu.memory_space<semaphore_mem>> -> memref<!tpu.dma_semaphore, #tpu.memory_space<semaphore_mem>>
    tpu.wait_dma2 semaphore(%83 : memref<!tpu.dma_semaphore, #tpu.memory_space<semaphore_mem>>) src(%80 : memref<1x128xf32, #tpu.memory_space<any>>) dst(%81 : memref<1x128xf32, #tpu.memory_space<vmem>>)
    %c5_i32_51 = arith.constant 5 : i32
    %c0_i32_52 = arith.constant 0 : i32
    %c0_i32_53 = arith.constant 0 : i32
    %84 = tpu.memref_slice %arg2[%c0_i32_52, %c0_i32_53] : memref<747x128xf32, #tpu.memory_space<any>> -> memref<1x128xf32, #tpu.memory_space<any>>
    %c0_i32_54 = arith.constant 0 : i32
    %85 = tpu.memref_slice %arg9[%c5_i32_51, %c0_i32_54] : memref<8x128xf32, #tpu.memory_space<vmem>> -> memref<1x128xf32, #tpu.memory_space<vmem>>
    %86 = tpu.memref_slice %arg11[%c5_i32_51] : memref<8x!tpu.dma_semaphore, #tpu.memory_space<semaphore_mem>> -> memref<1x!tpu.dma_semaphore, #tpu.memory_space<semaphore_mem>>
    %87 = tpu.memref_squeeze %86 : memref<1x!tpu.dma_semaphore, #tpu.memory_space<semaphore_mem>> -> memref<!tpu.dma_semaphore, #tpu.memory_space<semaphore_mem>>
    tpu.wait_dma2 semaphore(%87 : memref<!tpu.dma_semaphore, #tpu.memory_space<semaphore_mem>>) src(%84 : memref<1x128xf32, #tpu.memory_space<any>>) dst(%85 : memref<1x128xf32, #tpu.memory_space<vmem>>)
    %c6_i32_55 = arith.constant 6 : i32
    %c0_i32_56 = arith.constant 0 : i32
    %c0_i32_57 = arith.constant 0 : i32
    %88 = tpu.memref_slice %arg2[%c0_i32_56, %c0_i32_57] : memref<747x128xf32, #tpu.memory_space<any>> -> memref<1x128xf32, #tpu.memory_space<any>>
    %c0_i32_58 = arith.constant 0 : i32
    %89 = tpu.memref_slice %arg9[%c6_i32_55, %c0_i32_58] : memref<8x128xf32, #tpu.memory_space<vmem>> -> memref<1x128xf32, #tpu.memory_space<vmem>>
    %90 = tpu.memref_slice %arg11[%c6_i32_55] : memref<8x!tpu.dma_semaphore, #tpu.memory_space<semaphore_mem>> -> memref<1x!tpu.dma_semaphore, #tpu.memory_space<semaphore_mem>>
    %91 = tpu.memref_squeeze %90 : memref<1x!tpu.dma_semaphore, #tpu.memory_space<semaphore_mem>> -> memref<!tpu.dma_semaphore, #tpu.memory_space<semaphore_mem>>
    tpu.wait_dma2 semaphore(%91 : memref<!tpu.dma_semaphore, #tpu.memory_space<semaphore_mem>>) src(%88 : memref<1x128xf32, #tpu.memory_space<any>>) dst(%89 : memref<1x128xf32, #tpu.memory_space<vmem>>)
    %c7_i32_59 = arith.constant 7 : i32
    %c0_i32_60 = arith.constant 0 : i32
    %c0_i32_61 = arith.constant 0 : i32
    %92 = tpu.memref_slice %arg2[%c0_i32_60, %c0_i32_61] : memref<747x128xf32, #tpu.memory_space<any>> -> memref<1x128xf32, #tpu.memory_space<any>>
    %c0_i32_62 = arith.constant 0 : i32
    %93 = tpu.memref_slice %arg9[%c7_i32_59, %c0_i32_62] : memref<8x128xf32, #tpu.memory_space<vmem>> -> memref<1x128xf32, #tpu.memory_space<vmem>>
    %94 = tpu.memref_slice %arg11[%c7_i32_59] : memref<8x!tpu.dma_semaphore, #tpu.memory_space<semaphore_mem>> -> memref<1x!tpu.dma_semaphore, #tpu.memory_space<semaphore_mem>>
    %95 = tpu.memref_squeeze %94 : memref<1x!tpu.dma_semaphore, #tpu.memory_space<semaphore_mem>> -> memref<!tpu.dma_semaphore, #tpu.memory_space<semaphore_mem>>
    tpu.wait_dma2 semaphore(%95 : memref<!tpu.dma_semaphore, #tpu.memory_space<semaphore_mem>>) src(%92 : memref<1x128xf32, #tpu.memory_space<any>>) dst(%93 : memref<1x128xf32, #tpu.memory_space<vmem>>)
    %c8_i32_63 = arith.constant 8 : i32
    %c0 = arith.constant 0 : index
    %c0_64 = arith.constant 0 : index
    %96 = vector.load %arg9[%c0, %c0_64] : memref<8x128xf32, #tpu.memory_space<vmem>>, vector<8x128xf32>
    %97 = arith.truncf %96 : vector<8x128xf32> to vector<8x128xbf16>
    %c0_65 = arith.constant 0 : index
    %c0_66 = arith.constant 0 : index
    %98 = vector.load %arg3[%c0_65, %c0_66] : memref<128x512xbf16, #tpu.memory_space<vmem>>, vector<128x512xbf16>
    %cst = arith.constant dense<0.000000e+00> : vector<8x512xf32>
    %99 = tpu.matmul %97, %98, %cst {dimension_numbers = #tpu.dot_dimension_numbers<[1], [0], [0], [1], [0, 0, 1, 1], [], []>} : vector<8x128xbf16>, vector<128x512xbf16>, vector<8x512xf32> -> vector<8x512xf32>
    %c0_67 = arith.constant 0 : index
    %c0_68 = arith.constant 0 : index
    %100 = vector.load %arg5[%c0_67, %c0_68] : memref<1x512xf32, #tpu.memory_space<vmem>>, vector<1x512xf32>
    %101 = vector.broadcast %100 : vector<1x512xf32> to vector<8x512xf32>
    %102 = arith.addf %99, %101 : vector<8x512xf32>
    %c0_69 = arith.constant 0 : index
    %c0_70 = arith.constant 0 : index
    %103 = vector.load %arg10[%c0_69, %c0_70] : memref<8x512xf32, #tpu.memory_space<vmem>>, vector<8x512xf32>
    tpu.vector_store %arg10[%c0_69, %c0_70], %102 {strides = array<i32>} : memref<8x512xf32, #tpu.memory_space<vmem>>, vector<8x512xf32>,
    %cst_71 = arith.constant 0.000000e+00 : f32
    %104 = vector.broadcast %cst_71 : f32 to vector<1x128xf32>
    %cst_72 = arith.constant 0.000000e+00 : f32
    %105 = vector.broadcast %cst_72 : f32 to vector<1x128xf32>
    %c0_i32_73 = arith.constant 0 : i32
    %106 = arith.index_cast %c0_i32_73 : i32 to index
    %c0_74 = arith.constant 0 : index
    %107 = vector.load %arg10[%106, %c0_74] : memref<8x512xf32, #tpu.memory_space<vmem>>, vector<1x512xf32>
    %108 = arith.truncf %104 : vector<1x128xf32> to vector<1x128xbf16>
    %c0_75 = arith.constant 0 : index
    %c0_76 = arith.constant 0 : index
    %109 = vector.load %arg4[%c0_75, %c0_76] : memref<128x512xbf16, #tpu.memory_space<vmem>>, vector<128x512xbf16>
    %cst_77 = arith.constant dense<0.000000e+00> : vector<1x512xf32>
    %110 = tpu.matmul %108, %109, %cst_77 {dimension_numbers = #tpu.dot_dimension_numbers<[1], [0], [0], [1], [0, 0, 1, 1], [], []>} : vector<1x128xbf16>, vector<128x512xbf16>, vector<1x512xf32> -> vector<1x512xf32>
    %111 = arith.addf %107, %110 : vector<1x512xf32>
    %112 = vector.extract_strided_slice %111 {offsets = [0, 0], sizes = [1, 128], strides = [1, 1]} : vector<1x512xf32> to vector<1x128xf32>
    %113 = arith.negf %112 : vector<1x128xf32>
    %114 = math.exp %113 : vector<1x128xf32>
    %cst_78 = arith.constant 1.000000e+00 : f32
    %115 = vector.broadcast %cst_78 : f32 to vector<1x128xf32>
    %116 = arith.addf %115, %114 : vector<1x128xf32>
    %117 = arith.divf %115, %116 : vector<1x128xf32>
    %118 = vector.extract_strided_slice %111 {offsets = [0, 128], sizes = [1, 128], strides = [1, 1]} : vector<1x512xf32> to vector<1x128xf32>
    %119 = arith.negf %118 : vector<1x128xf32>
    %120 = math.exp %119 : vector<1x128xf32>
    %cst_79 = arith.constant 1.000000e+00 : f32
    %121 = vector.broadcast %cst_79 : f32 to vector<1x128xf32>
    %122 = arith.addf %121, %120 : vector<1x128xf32>
    %123 = arith.divf %121, %122 : vector<1x128xf32>
    %124 = vector.extract_strided_slice %111 {offsets = [0, 256], sizes = [1, 128], strides = [1, 1]} : vector<1x512xf32> to vector<1x128xf32>
    %125 = math.tanh %124 : vector<1x128xf32>
    %126 = vector.extract_strided_slice %111 {offsets = [0, 384], sizes = [1, 128], strides = [1, 1]} : vector<1x512xf32> to vector<1x128xf32>
    %127 = arith.negf %126 : vector<1x128xf32>
    %128 = math.exp %127 : vector<1x128xf32>
    %cst_80 = arith.constant 1.000000e+00 : f32
    %129 = vector.broadcast %cst_80 : f32 to vector<1x128xf32>
    %130 = arith.addf %129, %128 : vector<1x128xf32>
    %131 = arith.divf %129, %130 : vector<1x128xf32>
    %132 = arith.mulf %123, %105 : vector<1x128xf32>
    %133 = arith.mulf %117, %125 : vector<1x128xf32>
    %134 = arith.addf %132, %133 : vector<1x128xf32>
    %135 = math.tanh %134 : vector<1x128xf32>
    %136 = arith.mulf %131, %135 : vector<1x128xf32>
    %137 = arith.index_cast %c0_i32_73 : i32 to index
    %c0_81 = arith.constant 0 : index
    %138 = vector.load %arg6[%137, %c0_81] : memref<8x128xf32, #tpu.memory_space<vmem>>, vector<1x128xf32>
    tpu.vector_store %arg6[%137, %c0_81], %136 {strides = array<i32>} : memref<8x128xf32, #tpu.memory_space<vmem>>, vector<1x128xf32>,
    %c1_i32_82 = arith.constant 1 : i32
    %139 = arith.index_cast %c1_i32_82 : i32 to index
    %c0_83 = arith.constant 0 : index
    %140 = vector.load %arg10[%139, %c0_83] : memref<8x512xf32, #tpu.memory_space<vmem>>, vector<1x512xf32>
    %141 = arith.truncf %136 : vector<1x128xf32> to vector<1x128xbf16>
    %c0_84 = arith.constant 0 : index
    %c0_85 = arith.constant 0 : index
    %142 = vector.load %arg4[%c0_84, %c0_85] : memref<128x512xbf16, #tpu.memory_space<vmem>>, vector<128x512xbf16>
    %cst_86 = arith.constant dense<0.000000e+00> : vector<1x512xf32>
    %143 = tpu.matmul %141, %142, %cst_86 {dimension_numbers = #tpu.dot_dimension_numbers<[1], [0], [0], [1], [0, 0, 1, 1], [], []>} : vector<1x128xbf16>, vector<128x512xbf16>, vector<1x512xf32> -> vector<1x512xf32>
    %144 = arith.addf %140, %143 : vector<1x512xf32>
    %145 = vector.extract_strided_slice %144 {offsets = [0, 0], sizes = [1, 128], strides = [1, 1]} : vector<1x512xf32> to vector<1x128xf32>
    %146 = arith.negf %145 : vector<1x128xf32>
    %147 = math.exp %146 : vector<1x128xf32>
    %cst_87 = arith.constant 1.000000e+00 : f32
    %148 = vector.broadcast %cst_87 : f32 to vector<1x128xf32>
    %149 = arith.addf %148, %147 : vector<1x128xf32>
    %150 = arith.divf %148, %149 : vector<1x128xf32>
    %151 = vector.extract_strided_slice %144 {offsets = [0, 128], sizes = [1, 128], strides = [1, 1]} : vector<1x512xf32> to vector<1x128xf32>
    %152 = arith.negf %151 : vector<1x128xf32>
    %153 = math.exp %152 : vector<1x128xf32>
    %cst_88 = arith.constant 1.000000e+00 : f32
    %154 = vector.broadcast %cst_88 : f32 to vector<1x128xf32>
    %155 = arith.addf %154, %153 : vector<1x128xf32>
    %156 = arith.divf %154, %155 : vector<1x128xf32>
    %157 = vector.extract_strided_slice %144 {offsets = [0, 256], sizes = [1, 128], strides = [1, 1]} : vector<1x512xf32> to vector<1x128xf32>
    %158 = math.tanh %157 : vector<1x128xf32>
    %159 = vector.extract_strided_slice %144 {offsets = [0, 384], sizes = [1, 128], strides = [1, 1]} : vector<1x512xf32> to vector<1x128xf32>
    %160 = arith.negf %159 : vector<1x128xf32>
    %161 = math.exp %160 : vector<1x128xf32>
    %cst_89 = arith.constant 1.000000e+00 : f32
    %162 = vector.broadcast %cst_89 : f32 to vector<1x128xf32>
    %163 = arith.addf %162, %161 : vector<1x128xf32>
    %164 = arith.divf %162, %163 : vector<1x128xf32>
    %165 = arith.mulf %156, %134 : vector<1x128xf32>
    %166 = arith.mulf %150, %158 : vector<1x128xf32>
    %167 = arith.addf %165, %166 : vector<1x128xf32>
    %168 = math.tanh %167 : vector<1x128xf32>
    %169 = arith.mulf %164, %168 : vector<1x128xf32>
    %170 = arith.index_cast %c1_i32_82 : i32 to index
    %c0_90 = arith.constant 0 : index
    %171 = vector.load %arg6[%170, %c0_90] : memref<8x128xf32, #tpu.memory_space<vmem>>, vector<1x128xf32>
    tpu.vector_store %arg6[%170, %c0_90], %169 {strides = array<i32>} : memref<8x128xf32, #tpu.memory_space<vmem>>, vector<1x128xf32>,
    %c2_i32_91 = arith.constant 2 : i32
    %172 = arith.index_cast %c2_i32_91 : i32 to index
    %c0_92 = arith.constant 0 : index
    %173 = vector.load %arg10[%172, %c0_92] : memref<8x512xf32, #tpu.memory_space<vmem>>, vector<1x512xf32>
    %174 = arith.truncf %169 : vector<1x128xf32> to vector<1x128xbf16>
    %c0_93 = arith.constant 0 : index
    %c0_94 = arith.constant 0 : index
    %175 = vector.load %arg4[%c0_93, %c0_94] : memref<128x512xbf16, #tpu.memory_space<vmem>>, vector<128x512xbf16>
    %cst_95 = arith.constant dense<0.000000e+00> : vector<1x512xf32>
    %176 = tpu.matmul %174, %175, %cst_95 {dimension_numbers = #tpu.dot_dimension_numbers<[1], [0], [0], [1], [0, 0, 1, 1], [], []>} : vector<1x128xbf16>, vector<128x512xbf16>, vector<1x512xf32> -> vector<1x512xf32>
    %177 = arith.addf %173, %176 : vector<1x512xf32>
    %178 = vector.extract_strided_slice %177 {offsets = [0, 0], sizes = [1, 128], strides = [1, 1]} : vector<1x512xf32> to vector<1x128xf32>
    %179 = arith.negf %178 : vector<1x128xf32>
    %180 = math.exp %179 : vector<1x128xf32>
    %cst_96 = arith.constant 1.000000e+00 : f32
    %181 = vector.broadcast %cst_96 : f32 to vector<1x128xf32>
    %182 = arith.addf %181, %180 : vector<1x128xf32>
    %183 = arith.divf %181, %182 : vector<1x128xf32>
    %184 = vector.extract_strided_slice %177 {offsets = [0, 128], sizes = [1, 128], strides = [1, 1]} : vector<1x512xf32> to vector<1x128xf32>
    %185 = arith.negf %184 : vector<1x128xf32>
    %186 = math.exp %185 : vector<1x128xf32>
    %cst_97 = arith.constant 1.000000e+00 : f32
    %187 = vector.broadcast %cst_97 : f32 to vector<1x128xf32>
    %188 = arith.addf %187, %186 : vector<1x128xf32>
    %189 = arith.divf %187, %188 : vector<1x128xf32>
    %190 = vector.extract_strided_slice %177 {offsets = [0, 256], sizes = [1, 128], strides = [1, 1]} : vector<1x512xf32> to vector<1x128xf32>
    %191 = math.tanh %190 : vector<1x128xf32>
    %192 = vector.extract_strided_slice %177 {offsets = [0, 384], sizes = [1, 128], strides = [1, 1]} : vector<1x512xf32> to vector<1x128xf32>
    %193 = arith.negf %192 : vector<1x128xf32>
    %194 = math.exp %193 : vector<1x128xf32>
    %cst_98 = arith.constant 1.000000e+00 : f32
    %195 = vector.broadcast %cst_98 : f32 to vector<1x128xf32>
    %196 = arith.addf %195, %194 : vector<1x128xf32>
    %197 = arith.divf %195, %196 : vector<1x128xf32>
    %198 = arith.mulf %189, %167 : vector<1x128xf32>
    %199 = arith.mulf %183, %191 : vector<1x128xf32>
    %200 = arith.addf %198, %199 : vector<1x128xf32>
    %201 = math.tanh %200 : vector<1x128xf32>
    %202 = arith.mulf %197, %201 : vector<1x128xf32>
    %203 = arith.index_cast %c2_i32_91 : i32 to index
    %c0_99 = arith.constant 0 : index
    %204 = vector.load %arg6[%203, %c0_99] : memref<8x128xf32, #tpu.memory_space<vmem>>, vector<1x128xf32>
    tpu.vector_store %arg6[%203, %c0_99], %202 {strides = array<i32>} : memref<8x128xf32, #tpu.memory_space<vmem>>, vector<1x128xf32>,
    %c3_i32_100 = arith.constant 3 : i32
    %205 = arith.index_cast %c3_i32_100 : i32 to index
    %c0_101 = arith.constant 0 : index
    %206 = vector.load %arg10[%205, %c0_101] : memref<8x512xf32, #tpu.memory_space<vmem>>, vector<1x512xf32>
    %207 = arith.truncf %202 : vector<1x128xf32> to vector<1x128xbf16>
    %c0_102 = arith.constant 0 : index
    %c0_103 = arith.constant 0 : index
    %208 = vector.load %arg4[%c0_102, %c0_103] : memref<128x512xbf16, #tpu.memory_space<vmem>>, vector<128x512xbf16>
    %cst_104 = arith.constant dense<0.000000e+00> : vector<1x512xf32>
    %209 = tpu.matmul %207, %208, %cst_104 {dimension_numbers = #tpu.dot_dimension_numbers<[1], [0], [0], [1], [0, 0, 1, 1], [], []>} : vector<1x128xbf16>, vector<128x512xbf16>, vector<1x512xf32> -> vector<1x512xf32>
    %210 = arith.addf %206, %209 : vector<1x512xf32>
    %211 = vector.extract_strided_slice %210 {offsets = [0, 0], sizes = [1, 128], strides = [1, 1]} : vector<1x512xf32> to vector<1x128xf32>
    %212 = arith.negf %211 : vector<1x128xf32>
    %213 = math.exp %212 : vector<1x128xf32>
    %cst_105 = arith.constant 1.000000e+00 : f32
    %214 = vector.broadcast %cst_105 : f32 to vector<1x128xf32>
    %215 = arith.addf %214, %213 : vector<1x128xf32>
    %216 = arith.divf %214, %215 : vector<1x128xf32>
    %217 = vector.extract_strided_slice %210 {offsets = [0, 128], sizes = [1, 128], strides = [1, 1]} : vector<1x512xf32> to vector<1x128xf32>
    %218 = arith.negf %217 : vector<1x128xf32>
    %219 = math.exp %218 : vector<1x128xf32>
    %cst_106 = arith.constant 1.000000e+00 : f32
    %220 = vector.broadcast %cst_106 : f32 to vector<1x128xf32>
    %221 = arith.addf %220, %219 : vector<1x128xf32>
    %222 = arith.divf %220, %221 : vector<1x128xf32>
    %223 = vector.extract_strided_slice %210 {offsets = [0, 256], sizes = [1, 128], strides = [1, 1]} : vector<1x512xf32> to vector<1x128xf32>
    %224 = math.tanh %223 : vector<1x128xf32>
    %225 = vector.extract_strided_slice %210 {offsets = [0, 384], sizes = [1, 128], strides = [1, 1]} : vector<1x512xf32> to vector<1x128xf32>
    %226 = arith.negf %225 : vector<1x128xf32>
    %227 = math.exp %226 : vector<1x128xf32>
    %cst_107 = arith.constant 1.000000e+00 : f32
    %228 = vector.broadcast %cst_107 : f32 to vector<1x128xf32>
    %229 = arith.addf %228, %227 : vector<1x128xf32>
    %230 = arith.divf %228, %229 : vector<1x128xf32>
    %231 = arith.mulf %222, %200 : vector<1x128xf32>
    %232 = arith.mulf %216, %224 : vector<1x128xf32>
    %233 = arith.addf %231, %232 : vector<1x128xf32>
    %234 = math.tanh %233 : vector<1x128xf32>
    %235 = arith.mulf %230, %234 : vector<1x128xf32>
    %236 = arith.index_cast %c3_i32_100 : i32 to index
    %c0_108 = arith.constant 0 : index
    %237 = vector.load %arg6[%236, %c0_108] : memref<8x128xf32, #tpu.memory_space<vmem>>, vector<1x128xf32>
    tpu.vector_store %arg6[%236, %c0_108], %235 {strides = array<i32>} : memref<8x128xf32, #tpu.memory_space<vmem>>, vector<1x128xf32>,
    %c4_i32_109 = arith.constant 4 : i32
    %238 = arith.index_cast %c4_i32_109 : i32 to index
    %c0_110 = arith.constant 0 : index
    %239 = vector.load %arg10[%238, %c0_110] : memref<8x512xf32, #tpu.memory_space<vmem>>, vector<1x512xf32>
    %240 = arith.truncf %235 : vector<1x128xf32> to vector<1x128xbf16>
    %c0_111 = arith.constant 0 : index
    %c0_112 = arith.constant 0 : index
    %241 = vector.load %arg4[%c0_111, %c0_112] : memref<128x512xbf16, #tpu.memory_space<vmem>>, vector<128x512xbf16>
    %cst_113 = arith.constant dense<0.000000e+00> : vector<1x512xf32>
    %242 = tpu.matmul %240, %241, %cst_113 {dimension_numbers = #tpu.dot_dimension_numbers<[1], [0], [0], [1], [0, 0, 1, 1], [], []>} : vector<1x128xbf16>, vector<128x512xbf16>, vector<1x512xf32> -> vector<1x512xf32>
    %243 = arith.addf %239, %242 : vector<1x512xf32>
    %244 = vector.extract_strided_slice %243 {offsets = [0, 0], sizes = [1, 128], strides = [1, 1]} : vector<1x512xf32> to vector<1x128xf32>
    %245 = arith.negf %244 : vector<1x128xf32>
    %246 = math.exp %245 : vector<1x128xf32>
    %cst_114 = arith.constant 1.000000e+00 : f32
    %247 = vector.broadcast %cst_114 : f32 to vector<1x128xf32>
    %248 = arith.addf %247, %246 : vector<1x128xf32>
    %249 = arith.divf %247, %248 : vector<1x128xf32>
    %250 = vector.extract_strided_slice %243 {offsets = [0, 128], sizes = [1, 128], strides = [1, 1]} : vector<1x512xf32> to vector<1x128xf32>
    %251 = arith.negf %250 : vector<1x128xf32>
    %252 = math.exp %251 : vector<1x128xf32>
    %cst_115 = arith.constant 1.000000e+00 : f32
    %253 = vector.broadcast %cst_115 : f32 to vector<1x128xf32>
    %254 = arith.addf %253, %252 : vector<1x128xf32>
    %255 = arith.divf %253, %254 : vector<1x128xf32>
    %256 = vector.extract_strided_slice %243 {offsets = [0, 256], sizes = [1, 128], strides = [1, 1]} : vector<1x512xf32> to vector<1x128xf32>
    %257 = math.tanh %256 : vector<1x128xf32>
    %258 = vector.extract_strided_slice %243 {offsets = [0, 384], sizes = [1, 128], strides = [1, 1]} : vector<1x512xf32> to vector<1x128xf32>
    %259 = arith.negf %258 : vector<1x128xf32>
    %260 = math.exp %259 : vector<1x128xf32>
    %cst_116 = arith.constant 1.000000e+00 : f32
    %261 = vector.broadcast %cst_116 : f32 to vector<1x128xf32>
    %262 = arith.addf %261, %260 : vector<1x128xf32>
    %263 = arith.divf %261, %262 : vector<1x128xf32>
    %264 = arith.mulf %255, %233 : vector<1x128xf32>
    %265 = arith.mulf %249, %257 : vector<1x128xf32>
    %266 = arith.addf %264, %265 : vector<1x128xf32>
    %267 = math.tanh %266 : vector<1x128xf32>
    %268 = arith.mulf %263, %267 : vector<1x128xf32>
    %269 = arith.index_cast %c4_i32_109 : i32 to index
    %c0_117 = arith.constant 0 : index
    %270 = vector.load %arg6[%269, %c0_117] : memref<8x128xf32, #tpu.memory_space<vmem>>, vector<1x128xf32>
    tpu.vector_store %arg6[%269, %c0_117], %268 {strides = array<i32>} : memref<8x128xf32, #tpu.memory_space<vmem>>, vector<1x128xf32>,
    %c5_i32_118 = arith.constant 5 : i32
    %271 = arith.index_cast %c5_i32_118 : i32 to index
    %c0_119 = arith.constant 0 : index
    %272 = vector.load %arg10[%271, %c0_119] : memref<8x512xf32, #tpu.memory_space<vmem>>, vector<1x512xf32>
    %273 = arith.truncf %268 : vector<1x128xf32> to vector<1x128xbf16>
    %c0_120 = arith.constant 0 : index
    %c0_121 = arith.constant 0 : index
    %274 = vector.load %arg4[%c0_120, %c0_121] : memref<128x512xbf16, #tpu.memory_space<vmem>>, vector<128x512xbf16>
    %cst_122 = arith.constant dense<0.000000e+00> : vector<1x512xf32>
    %275 = tpu.matmul %273, %274, %cst_122 {dimension_numbers = #tpu.dot_dimension_numbers<[1], [0], [0], [1], [0, 0, 1, 1], [], []>} : vector<1x128xbf16>, vector<128x512xbf16>, vector<1x512xf32> -> vector<1x512xf32>
    %276 = arith.addf %272, %275 : vector<1x512xf32>
    %277 = vector.extract_strided_slice %276 {offsets = [0, 0], sizes = [1, 128], strides = [1, 1]} : vector<1x512xf32> to vector<1x128xf32>
    %278 = arith.negf %277 : vector<1x128xf32>
    %279 = math.exp %278 : vector<1x128xf32>
    %cst_123 = arith.constant 1.000000e+00 : f32
    %280 = vector.broadcast %cst_123 : f32 to vector<1x128xf32>
    %281 = arith.addf %280, %279 : vector<1x128xf32>
    %282 = arith.divf %280, %281 : vector<1x128xf32>
    %283 = vector.extract_strided_slice %276 {offsets = [0, 128], sizes = [1, 128], strides = [1, 1]} : vector<1x512xf32> to vector<1x128xf32>
    %284 = arith.negf %283 : vector<1x128xf32>
    %285 = math.exp %284 : vector<1x128xf32>
    %cst_124 = arith.constant 1.000000e+00 : f32
    %286 = vector.broadcast %cst_124 : f32 to vector<1x128xf32>
    %287 = arith.addf %286, %285 : vector<1x128xf32>
    %288 = arith.divf %286, %287 : vector<1x128xf32>
    %289 = vector.extract_strided_slice %276 {offsets = [0, 256], sizes = [1, 128], strides = [1, 1]} : vector<1x512xf32> to vector<1x128xf32>
    %290 = math.tanh %289 : vector<1x128xf32>
    %291 = vector.extract_strided_slice %276 {offsets = [0, 384], sizes = [1, 128], strides = [1, 1]} : vector<1x512xf32> to vector<1x128xf32>
    %292 = arith.negf %291 : vector<1x128xf32>
    %293 = math.exp %292 : vector<1x128xf32>
    %cst_125 = arith.constant 1.000000e+00 : f32
    %294 = vector.broadcast %cst_125 : f32 to vector<1x128xf32>
    %295 = arith.addf %294, %293 : vector<1x128xf32>
    %296 = arith.divf %294, %295 : vector<1x128xf32>
    %297 = arith.mulf %288, %266 : vector<1x128xf32>
    %298 = arith.mulf %282, %290 : vector<1x128xf32>
    %299 = arith.addf %297, %298 : vector<1x128xf32>
    %300 = math.tanh %299 : vector<1x128xf32>
    %301 = arith.mulf %296, %300 : vector<1x128xf32>
    %302 = arith.index_cast %c5_i32_118 : i32 to index
    %c0_126 = arith.constant 0 : index
    %303 = vector.load %arg6[%302, %c0_126] : memref<8x128xf32, #tpu.memory_space<vmem>>, vector<1x128xf32>
    tpu.vector_store %arg6[%302, %c0_126], %301 {strides = array<i32>} : memref<8x128xf32, #tpu.memory_space<vmem>>, vector<1x128xf32>,
    %c6_i32_127 = arith.constant 6 : i32
    %304 = arith.index_cast %c6_i32_127 : i32 to index
    %c0_128 = arith.constant 0 : index
    %305 = vector.load %arg10[%304, %c0_128] : memref<8x512xf32, #tpu.memory_space<vmem>>, vector<1x512xf32>
    %306 = arith.truncf %301 : vector<1x128xf32> to vector<1x128xbf16>
    %c0_129 = arith.constant 0 : index
    %c0_130 = arith.constant 0 : index
    %307 = vector.load %arg4[%c0_129, %c0_130] : memref<128x512xbf16, #tpu.memory_space<vmem>>, vector<128x512xbf16>
    %cst_131 = arith.constant dense<0.000000e+00> : vector<1x512xf32>
    %308 = tpu.matmul %306, %307, %cst_131 {dimension_numbers = #tpu.dot_dimension_numbers<[1], [0], [0], [1], [0, 0, 1, 1], [], []>} : vector<1x128xbf16>, vector<128x512xbf16>, vector<1x512xf32> -> vector<1x512xf32>
    %309 = arith.addf %305, %308 : vector<1x512xf32>
    %310 = vector.extract_strided_slice %309 {offsets = [0, 0], sizes = [1, 128], strides = [1, 1]} : vector<1x512xf32> to vector<1x128xf32>
    %311 = arith.negf %310 : vector<1x128xf32>
    %312 = math.exp %311 : vector<1x128xf32>
    %cst_132 = arith.constant 1.000000e+00 : f32
    %313 = vector.broadcast %cst_132 : f32 to vector<1x128xf32>
    %314 = arith.addf %313, %312 : vector<1x128xf32>
    %315 = arith.divf %313, %314 : vector<1x128xf32>
    %316 = vector.extract_strided_slice %309 {offsets = [0, 128], sizes = [1, 128], strides = [1, 1]} : vector<1x512xf32> to vector<1x128xf32>
    %317 = arith.negf %316 : vector<1x128xf32>
    %318 = math.exp %317 : vector<1x128xf32>
    %cst_133 = arith.constant 1.000000e+00 : f32
    %319 = vector.broadcast %cst_133 : f32 to vector<1x128xf32>
    %320 = arith.addf %319, %318 : vector<1x128xf32>
    %321 = arith.divf %319, %320 : vector<1x128xf32>
    %322 = vector.extract_strided_slice %309 {offsets = [0, 256], sizes = [1, 128], strides = [1, 1]} : vector<1x512xf32> to vector<1x128xf32>
    %323 = math.tanh %322 : vector<1x128xf32>
    %324 = vector.extract_strided_slice %309 {offsets = [0, 384], sizes = [1, 128], strides = [1, 1]} : vector<1x512xf32> to vector<1x128xf32>
    %325 = arith.negf %324 : vector<1x128xf32>
    %326 = math.exp %325 : vector<1x128xf32>
    %cst_134 = arith.constant 1.000000e+00 : f32
    %327 = vector.broadcast %cst_134 : f32 to vector<1x128xf32>
    %328 = arith.addf %327, %326 : vector<1x128xf32>
    %329 = arith.divf %327, %328 : vector<1x128xf32>
    %330 = arith.mulf %321, %299 : vector<1x128xf32>
    %331 = arith.mulf %315, %323 : vector<1x128xf32>
    %332 = arith.addf %330, %331 : vector<1x128xf32>
    %333 = math.tanh %332 : vector<1x128xf32>
    %334 = arith.mulf %329, %333 : vector<1x128xf32>
    %335 = arith.index_cast %c6_i32_127 : i32 to index
    %c0_135 = arith.constant 0 : index
    %336 = vector.load %arg6[%335, %c0_135] : memref<8x128xf32, #tpu.memory_space<vmem>>, vector<1x128xf32>
    tpu.vector_store %arg6[%335, %c0_135], %334 {strides = array<i32>} : memref<8x128xf32, #tpu.memory_space<vmem>>, vector<1x128xf32>,
    %c7_i32_136 = arith.constant 7 : i32
    %337 = arith.index_cast %c7_i32_136 : i32 to index
    %c0_137 = arith.constant 0 : index
    %338 = vector.load %arg10[%337, %c0_137] : memref<8x512xf32, #tpu.memory_space<vmem>>, vector<1x512xf32>
    %339 = arith.truncf %334 : vector<1x128xf32> to vector<1x128xbf16>
    %c0_138 = arith.constant 0 : index
    %c0_139 = arith.constant 0 : index
    %340 = vector.load %arg4[%c0_138, %c0_139] : memref<128x512xbf16, #tpu.memory_space<vmem>>, vector<128x512xbf16>
    %cst_140 = arith.constant dense<0.000000e+00> : vector<1x512xf32>
    %341 = tpu.matmul %339, %340, %cst_140 {dimension_numbers = #tpu.dot_dimension_numbers<[1], [0], [0], [1], [0, 0, 1, 1], [], []>} : vector<1x128xbf16>, vector<128x512xbf16>, vector<1x512xf32> -> vector<1x512xf32>
    %342 = arith.addf %338, %341 : vector<1x512xf32>
    %343 = vector.extract_strided_slice %342 {offsets = [0, 0], sizes = [1, 128], strides = [1, 1]} : vector<1x512xf32> to vector<1x128xf32>
    %344 = arith.negf %343 : vector<1x128xf32>
    %345 = math.exp %344 : vector<1x128xf32>
    %cst_141 = arith.constant 1.000000e+00 : f32
    %346 = vector.broadcast %cst_141 : f32 to vector<1x128xf32>
    %347 = arith.addf %346, %345 : vector<1x128xf32>
    %348 = arith.divf %346, %347 : vector<1x128xf32>
    %349 = vector.extract_strided_slice %342 {offsets = [0, 128], sizes = [1, 128], strides = [1, 1]} : vector<1x512xf32> to vector<1x128xf32>
    %350 = arith.negf %349 : vector<1x128xf32>
    %351 = math.exp %350 : vector<1x128xf32>
    %cst_142 = arith.constant 1.000000e+00 : f32
    %352 = vector.broadcast %cst_142 : f32 to vector<1x128xf32>
    %353 = arith.addf %352, %351 : vector<1x128xf32>
    %354 = arith.divf %352, %353 : vector<1x128xf32>
    %355 = vector.extract_strided_slice %342 {offsets = [0, 256], sizes = [1, 128], strides = [1, 1]} : vector<1x512xf32> to vector<1x128xf32>
    %356 = math.tanh %355 : vector<1x128xf32>
    %357 = vector.extract_strided_slice %342 {offsets = [0, 384], sizes = [1, 128], strides = [1, 1]} : vector<1x512xf32> to vector<1x128xf32>
    %358 = arith.negf %357 : vector<1x128xf32>
    %359 = math.exp %358 : vector<1x128xf32>
    %cst_143 = arith.constant 1.000000e+00 : f32
    %360 = vector.broadcast %cst_143 : f32 to vector<1x128xf32>
    %361 = arith.addf %360, %359 : vector<1x128xf32>
    %362 = arith.divf %360, %361 : vector<1x128xf32>
    %363 = arith.mulf %354, %332 : vector<1x128xf32>
    %364 = arith.mulf %348, %356 : vector<1x128xf32>
    %365 = arith.addf %363, %364 : vector<1x128xf32>
    %366 = math.tanh %365 : vector<1x128xf32>
    %367 = arith.mulf %362, %366 : vector<1x128xf32>
    %368 = arith.index_cast %c7_i32_136 : i32 to index
    %c0_144 = arith.constant 0 : index
    %369 = vector.load %arg6[%368, %c0_144] : memref<8x128xf32, #tpu.memory_space<vmem>>, vector<1x128xf32>
    tpu.vector_store %arg6[%368, %c0_144], %367 {strides = array<i32>} : memref<8x128xf32, #tpu.memory_space<vmem>>, vector<1x128xf32>,
    %c8_i32_145 = arith.constant 8 : i32
    %c0_146 = arith.constant 0 : index
    %c0_147 = arith.constant 0 : index
    %370 = vector.load %arg7[%c0_146, %c0_147] : memref<1x128xf32, #tpu.memory_space<vmem>>, vector<1x128xf32>
    tpu.vector_store %arg7[%c0_146, %c0_147], %367 {strides = array<i32>} : memref<1x128xf32, #tpu.memory_space<vmem>>, vector<1x128xf32>,
    %c0_148 = arith.constant 0 : index
    %c0_149 = arith.constant 0 : index
    %371 = vector.load %arg8[%c0_148, %c0_149] : memref<1x128xf32, #tpu.memory_space<vmem>>, vector<1x128xf32>
    tpu.vector_store %arg8[%c0_148, %c0_149], %365 {strides = array<i32>} : memref<1x128xf32, #tpu.memory_space<vmem>>, vector<1x128xf32>,
    return
  }
  func.func @transform_1(%arg0: i32, %arg1: memref<8xi32, #tpu.memory_space<smem>>) -> (i32, i32) {
    %c0_i32 = arith.constant 0 : i32
    %c0_i32_0 = arith.constant 0 : i32
    %c0_i32_1 = arith.constant 0 : i32
    return %c0_i32, %c0_i32_0 : i32, i32
  }
  func.func @transform_2(%arg0: i32, %arg1: memref<8xi32, #tpu.memory_space<smem>>) -> (i32, i32) {
    %c0_i32 = arith.constant 0 : i32
    %c0_i32_0 = arith.constant 0 : i32
    %c0_i32_1 = arith.constant 0 : i32
    return %c0_i32, %c0_i32_0 : i32, i32
  }
  func.func @transform_3(%arg0: i32, %arg1: memref<8xi32, #tpu.memory_space<smem>>) -> (i32, i32) {
    %c0_i32 = arith.constant 0 : i32
    %c0_i32_0 = arith.constant 0 : i32
    %c0_i32_1 = arith.constant 0 : i32
    return %c0_i32, %c0_i32_0 : i32, i32
  }
  func.func @transform_4(%arg0: i32, %arg1: memref<8xi32, #tpu.memory_space<smem>>) -> (i32, i32) {
    %c0_i32 = arith.constant 0 : i32
    %c0_i32_0 = arith.constant 0 : i32
    %c0_i32_1 = arith.constant 0 : i32
    return %c0_i32, %c0_i32_0 : i32, i32
  }
  func.func @transform_5(%arg0: i32, %arg1: memref<8xi32, #tpu.memory_space<smem>>) -> (i32, i32) {
    %c0_i32 = arith.constant 0 : i32
    %c0_i32_0 = arith.constant 0 : i32
    %c0_i32_1 = arith.constant 0 : i32
    return %c0_i32, %c0_i32_0 : i32, i32
  }
  func.func @transform_6(%arg0: i32, %arg1: memref<8xi32, #tpu.memory_space<smem>>) -> (i32, i32) {
    %c0_i32 = arith.constant 0 : i32
    %c0_i32_0 = arith.constant 0 : i32
    %c0_i32_1 = arith.constant 0 : i32
    return %c0_i32, %c0_i32_0 : i32, i32
  }
}

</mosaic_0001>

<bundles_post_ra>
// kernel: tpu_custom_call.1
= control target key start
LH: loop header
LB: loop body
LE: loop exit
PB: predicated region body
PF: predicated region fallthrough
CT: control target
= control target key end

     0   :  { %s5149_s0 = inlined_call_operand.hbm [shape: s32[8], index: 0, kind: input, shape index: {}]   ;;  %s5150_s1 = inlined_call_operand.hbm [shape: f32[747,128], index: 1, kind: input, shape index: {}]   ;;  %s5151_s2 = inlined_call_operand.hbm [shape: bf16[128,512], index: 2, kind: input, shape index: {}]   ;;  %s5152_s3 = inlined_call_operand.hbm [shape: bf16[128,512], index: 3, kind: input, shape index: {}]   ;;  %s5153_s4 = inlined_call_operand.vmem [shape: f32[1,512], index: 4, kind: input, shape index: {}]   ;;  %s5154_s5 = inlined_call_operand.hbm [shape: f32[8,128], index: 5, kind: output, shape index: {0}]   ;;  %s5155_s6 = inlined_call_operand.hbm [shape: f32[1,128], index: 6, kind: output, shape index: {1}]   ;;  %s5156_s7 = inlined_call_operand.hbm [shape: f32[1,128], index: 7, kind: output, shape index: {2}]  }
   0x1   :  { %s4038_s26 = scalar_lea.hbm %s5149_s0, 16 }
   0x2   :  { %p4039_p0 = scmp.ne.s32.totalorder %s5149_s0, %s4038_s26  ;;  %p4042_p1 = scmp.lt.u32.totalorder %s4038_s26, %s5149_s0 }
   0x4   :  { %p4044_p2 = pnand %p4042_p1, %p4039_p0 }
   0x6   :  { %4047 = shalt.err (!%p4044_p2)  }
   0x7   :  { %s4376_s8 = smov [#allocation6]  }
   0x8   :  { %14 = dma.hbm_to_smem %s5149_s0, 16, %s4376_s8, [#allocation5] }
   0x9   :  { %4350 = dma.done.wait [#allocation5], 16 }
   0xa   :  { %4351 = vsyncadd [#allocation5], 4294967280 }
   0xb   :  { %16 = sfence }
   0xc   :  { %17 = vsyncpa [#allocation8], 0 }
   0xd   :  { %18 = vsyncpa [#allocation11], 0 }
   0xe   :  { %19 = vsyncpa [#allocation9], 0 }
   0xf   :  { %20 = vsyncpa [#allocation14], 0  ;;  %s4377_s11 = smov [#allocation7]   ;;  %s4048_s15 = scalar_lea.hbm %s5151_s2, 4096 }
  0x10   :  { %s26_s12 = sshll.u32 %s4377_s11, 4  ;;  %p4049_p3 = scmp.ne.s32.totalorder %s5151_s2, %s4048_s15  ;;  %s27_s12 = int_to_ptr.vmem [resolvable:$true] %s26_s12 }
  0x11   :  { %p4052_p4 = scmp.lt.u32.totalorder %s4048_s15, %s5151_s2 }
  0x13   :  { %p4054_p5 = pnand %p4052_p4, %p4049_p3 }
  0x15   :  { %4057 = shalt.err (!%p4054_p5)
}
  0x16   :  { %s4058_s19 = scalar_lea.vmem %s27_s12, 4096  ;;  %p4063_p7 = scmp.lt.s32.totalorder %s27_s12, %s27_s12 }
  0x17   :  { %p4059_p6 = scmp.ne.s32.totalorder %s27_s12, %s4058_s19  ;;  %p4064_p8 = scmp.lt.s32.totalorder %s4058_s19, %s4058_s19 }
  0x19   :  { %p4065_p9 = por %p4064_p8, %p4063_p7 }
  0x1b   :  { %p4066_p10 = pnand %p4065_p9, %p4059_p6 }
  0x1d   :  { %4069 = shalt.err (!%p4066_p10)
}
  0x1e   :  { %s4378_s20 = smov 256   ;;  %s4379_s21 = smov 16  }
  0x1f   :  { %32 = dma.hbm_to_vmem [thread:$0]  %s5151_s2, 4096, %s27_s12, [#allocation8], %s4378_s20, %s4378_s20, %s4379_s21  }
  0x20   :  { %s4380_s24 = smov [#allocation10]   ;;  %s4070_s28 = scalar_lea.hbm %s5152_s3, 4096 }
  0x21   :  { %s38_s25 = sshll.u32 %s4380_s24, 4  ;;  %p4071_p11 = scmp.ne.s32.totalorder %s5152_s3, %s4070_s28  ;;  %s39_s25 = int_to_ptr.vmem [resolvable:$true] %s38_s25 }
  0x22   :  { %p4074_p12 = scmp.lt.u32.totalorder %s4070_s28, %s5152_s3 }
  0x24   :  { %p4076_p13 = pnand %p4074_p12, %p4071_p11 }
  0x26   :  { %4079 = shalt.err (!%p4076_p13)
}
  0x27   :  { %s4080_s10 = scalar_lea.vmem %s39_s25, 4096  ;;  %p4085_p1 = scmp.lt.s32.totalorder %s39_s25, %s39_s25 }
  0x28   :  { %p4081_p0 = scmp.ne.s32.totalorder %s39_s25, %s4080_s10  ;;  %p4086_p2 = scmp.lt.s32.totalorder %s4080_s10, %s4080_s10 }
  0x2a   :  { %p4087_p3 = por %p4086_p2, %p4085_p1 }
  0x2c   :  { %p4088_p4 = pnand %p4087_p3, %p4081_p0 }
  0x2e   :  { %4091 = shalt.err (!%p4088_p4)
}
  0x2f   :  { %44 = dma.hbm_to_vmem [thread:$0]  %s5152_s3, 4096, %s39_s25, [#allocation11], %s4378_s20, %s4378_s20, %s4379_s21  }
  0x30   :  { %4352 = dma.done.wait [#allocation8], 4096  }
  0x31   :  { %4353 = vsyncadd [#allocation8], 4294963200 }
  0x32   :  { %4354 = dma.done.wait [#allocation11], 4096  }
  0x33   :  { %4355 = vsyncadd [#allocation11], 4294963200  ;;  %s54_s12 = sld [smem:[#allocation6]]  ;;  %s4381_s13 = smov [#allocation2]  }
  0x34   :  { %s68_s14 = sshll.u32 %s4381_s13, 4  ;;  %s3363_s15 = sld [smem:[#allocation6 + $0x1]]  ;;  %s4470_s14 = int_to_ptr.vmem [resolvable:$true] %s68_s14 }
  0x35   :  { %s4382_s16 = smov [#allocation2 + $0x1]   ;;  %s4472_s18 = sld [smem:[#allocation6 + $0x2]] }
  0x36   :  { %s88_s17 = sshll.u32 %s4382_s16, 4  ;;  %s4383_s0 = smov [#allocation2 + $0x2]   ;;  %s4474_s17 = int_to_ptr.vmem [resolvable:$true] %s88_s17 }
  0x37   :  { %s108_s19 = sshll.u32 %s4383_s0, 4  ;;  %s4476_s3 = sld [smem:[#allocation6 + $0x3]]  ;;  %s4478_s19 = int_to_ptr.vmem [resolvable:$true] %s108_s19 }
  0x38   :  { %s4487_s28 = scalar_lea.hbm %s5150_s1, 12032 }
  0x39   :  { %p55_p5 = scmp.gt.s32.totalorder %s54_s12, 0  ;;  %p3357_p6 = scmp.lt.s32.totalorder %s54_s12, 746 }
  0x3a   :  { %p73_p7 = scmp.gt.s32.totalorder %s3363_s15, 0  ;;  %p3364_p8 = scmp.lt.s32.totalorder %s3363_s15, 746 }
  0x3b   :  { %s5160_s12 = smov (!%p55_p5, %s54_s12), 0  ;;  %p93_p9 = scmp.gt.s32.totalorder %s4472_s18, 0 }
  0x3c   :  { %s5162_s15 = smov (!%p73_p7, %s3363_s15), 0  ;;  %s5164_s12 = smov (!%p3357_p6, %s5160_s12), 746 }
  0x3d   :  { %s5166_s15 = smov (!%p3364_p8, %s5162_s15), 746  ;;  %s3362_s20 = sshll.u32 %s5164_s12, 4 }
  0x3e   :  { %s60_s23 = scalar_lea.hbm %s5150_s1, %s3362_s20  ;;  %s3369_s24 = sshll.u32 %s5166_s15, 4 }
  0x3f   :  { %s4092_s25 = scalar_lea.hbm %s60_s23, 16  ;;  %p4095_p11 = scmp.lt.u32.totalorder %s60_s23, %s5150_s1 }
  0x40   :  { %p4093_p10 = scmp.ne.s32.totalorder %s60_s23, %s4092_s25  ;;  %p4096_p12 = scmp.lt.u32.totalorder %s4487_s28, %s4092_s25 }
  0x41   :  { %p4098_p0 = scmp.lt.u32.totalorder %s4092_s25, %s60_s23 }
  0x42   :  { %p4097_p13 = por %p4096_p12, %p4095_p11 }
  0x44   :  { %p4099_p1 = por %p4098_p0, %p4097_p13 }
  0x46   :  { %p4100_p2 = pnand %p4099_p1, %p4093_p10 }
  0x48   :  { %4103 = shalt.err (!%p4100_p2)  }
  0x49   :  { %s4104_s8 = scalar_lea.vmem %s4470_s14, 16  ;;  %s4496_s9 = scalar_lea.vmem %s4470_s14, 128 }
  0x4a   :  { %p4105_p3 = scmp.ne.s32.totalorder %s4470_s14, %s4104_s8  ;;  %p4109_p4 = scmp.lt.s32.totalorder %s4470_s14, %s4470_s14 }
  0x4b   :  { %p4110_p5 = scmp.lt.s32.totalorder %s4496_s9, %s4104_s8 }
  0x4d   :  { %p4111_p6 = por %p4110_p5, %p4109_p4 }
  0x4f   :  { %p4112_p7 = pnand %p4111_p6, %p4105_p3 }
  0x51   :  { %4115 = shalt.err (!%p4112_p7)  }
  0x52   :  { %71 = dma.hbm_to_vmem [thread:$0]  %s60_s23, 16, %s4470_s14, [#allocation4] }
  0x53   :  { %s78_s11 = scalar_lea.hbm %s5150_s1, %s3369_s24  ;;  %p3371_p8 = scmp.lt.s32.totalorder %s4472_s18, 746 }
  0x54   :  { %s4116_s12 = scalar_lea.hbm %s78_s11, 16  ;;  %p4119_p11 = scmp.lt.u32.totalorder %s78_s11, %s5150_s1 }
  0x55   :  { %p4117_p10 = scmp.ne.s32.totalorder %s78_s11, %s4116_s12  ;;  %p4120_p12 = scmp.lt.u32.totalorder %s4487_s28, %s4116_s12 }
  0x56   :  { %p4122_p0 = scmp.lt.u32.totalorder %s4116_s12, %s78_s11 }
  0x57   :  { %p4121_p13 = por %p4120_p12, %p4119_p11 }
  0x59   :  { %p4123_p1 = por %p4122_p0, %p4121_p13 }
  0x5b   :  { %p4124_p2 = pnand %p4123_p1, %p4117_p10 }
  0x5d   :  { %4127 = shalt.err (!%p4124_p2)  }
  0x5e   :  { %s4128_s16 = scalar_lea.vmem %s4474_s17, 16  ;;  %p4133_p4 = scmp.lt.s32.totalorder %s4474_s17, %s4470_s14 }
  0x5f   :  { %p4129_p3 = scmp.ne.s32.totalorder %s4474_s17, %s4128_s16  ;;  %p4134_p5 = scmp.lt.s32.totalorder %s4496_s9, %s4128_s16 }
  0x61   :  { %p4135_p6 = por %p4134_p5, %p4133_p4 }
  0x63   :  { %p4136_p7 = pnand %p4135_p6, %p4129_p3 }
  0x65   :  { %4139 = shalt.err (!%p4136_p7)  }
  0x66   :  { %91 = dma.hbm_to_vmem [thread:$0]  %s78_s11, 16, %s4474_s17, [#allocation4 + $0x1] }
  0x67   :  { %s94_s0 = scalar_select %p93_p9, %s4472_s18, 0 }
  0x68   :  { %p113_p10 = scmp.gt.s32.totalorder %s4476_s3, 0  ;;  %p3378_p11 = scmp.lt.s32.totalorder %s4476_s3, 746 }
  0x69   :  { %s5168_s0 = smov (!%p3371_p8, %s94_s0), 746  ;;  %s4384_s22 = smov [#allocation2 + $0x3]  }
  0x6a   :  { %s114_s20 = scalar_select %p113_p10, %s4476_s3, 0 }
  0x6b   :  { %s3376_s21 = sshll.u32 %s5168_s0, 4  ;;  %s128_s23 = sshll.u32 %s4384_s22, 4  ;;  %s4527_s23 = int_to_ptr.vmem [resolvable:$true] %s128_s23 }
  0x6c   :  { %s98_s26 = scalar_lea.hbm %s5150_s1, %s3376_s21 }
  0x6d   :  { %s4140_s27 = scalar_lea.hbm %s98_s26, 16  ;;  %p4143_p9 = scmp.lt.u32.totalorder %s98_s26, %s5150_s1 }
  0x6e   :  { %p4141_p12 = scmp.ne.s32.totalorder %s98_s26, %s4140_s27  ;;  %p4144_p13 = scmp.lt.u32.totalorder %s4487_s28, %s4140_s27 }
  0x6f   :  { %p4146_p1 = scmp.lt.u32.totalorder %s4140_s27, %s98_s26 }
  0x70   :  { %p4145_p0 = por %p4144_p13, %p4143_p9 }
  0x72   :  { %p4147_p8 = por %p4146_p1, %p4145_p0 }
  0x74   :  { %p4148_p2 = pnand %p4147_p8, %p4141_p12 }
  0x76   :  { %4151 = shalt.err (!%p4148_p2)  }
  0x77   :  { %s4152_s18 = scalar_lea.vmem %s4478_s19, 16  ;;  %p4157_p4 = scmp.lt.s32.totalorder %s4478_s19, %s4470_s14 }
  0x78   :  { %p4153_p3 = scmp.ne.s32.totalorder %s4478_s19, %s4152_s18  ;;  %p4158_p5 = scmp.lt.s32.totalorder %s4496_s9, %s4152_s18 }
  0x7a   :  { %p4159_p6 = por %p4158_p5, %p4157_p4 }
  0x7c   :  { %p4160_p7 = pnand %p4159_p6, %p4153_p3 }
  0x7e   :  { %4163 = shalt.err (!%p4160_p7)  }
  0x7f   :  { %111 = dma.hbm_to_vmem [thread:$0]  %s98_s26, 16, %s4478_s19, [#allocation4 + $0x2] }
  0x80   :  { %s5170_s20 = smov (!%p3378_p11, %s114_s20), 746  ;;  %s4541_s30 = sld [smem:[#allocation6 + $0x4]] }
  0x81   :  { %s3383_s8 = sshll.u32 %s5170_s20, 4  ;;  %s4385_s10 = smov [#allocation2 + $0x4]  }
  0x82   :  { %s148_s2 = sshll.u32 %s4385_s10, 4  ;;  %s118_s13 = scalar_lea.hbm %s5150_s1, %s3383_s8  ;;  %s4546_s2 = int_to_ptr.vmem [resolvable:$true] %s148_s2 }
  0x83   :  { %s4164_s15 = scalar_lea.hbm %s118_s13, 16  ;;  %p4167_p12 = scmp.lt.u32.totalorder %s118_s13, %s5150_s1 }
  0x84   :  { %p4165_p10 = scmp.ne.s32.totalorder %s118_s13, %s4164_s15  ;;  %p4168_p9 = scmp.lt.u32.totalorder %s4487_s28, %s4164_s15 }
  0x85   :  { %p4170_p11 = scmp.lt.u32.totalorder %s4164_s15, %s118_s13 }
  0x86   :  { %p4169_p13 = por %p4168_p9, %p4167_p12 }
  0x88   :  { %p4171_p0 = por %p4170_p11, %p4169_p13 }
  0x8a   :  { %p4172_p1 = pnand %p4171_p0, %p4165_p10 }
  0x8c   :  { %4175 = shalt.err (!%p4172_p1)  }
  0x8d   :  { %s4176_s19 = scalar_lea.vmem %s4527_s23, 16  ;;  %p4181_p2 = scmp.lt.s32.totalorder %s4527_s23, %s4470_s14 }
  0x8e   :  { %p4177_p8 = scmp.ne.s32.totalorder %s4527_s23, %s4176_s19  ;;  %p4182_p3 = scmp.lt.s32.totalorder %s4496_s9, %s4176_s19 }
  0x90   :  { %p4183_p4 = por %p4182_p3, %p4181_p2 }
  0x92   :  { %p4184_p5 = pnand %p4183_p4, %p4177_p8 }
  0x94   :  { %4187 = shalt.err (!%p4184_p5)  }
  0x95   :  { %131 = dma.hbm_to_vmem [thread:$0]  %s118_s13, 16, %s4527_s23, [#allocation4 + $0x3] }
  0x96   :  { %s4558_s3 = sld [smem:[#allocation6 + $0x5]]  ;;  %s4386_s20 = smov [#allocation2 + $0x5]  }
  0x97   :  { %s168_s21 = sshll.u32 %s4386_s20, 4  ;;  %s4560_s22 = sld [smem:[#allocation6 + $0x6]]  ;;  %s4564_s21 = int_to_ptr.vmem [resolvable:$true] %s168_s21 }
  0x98   :  { %p133_p6 = scmp.gt.s32.totalorder %s4541_s30, 0  ;;  %p3385_p7 = scmp.lt.s32.totalorder %s4541_s30, 746 }
  0x99   :  { %s4387_s24 = smov [#allocation2 + $0x6]   ;;  %s4569_s23 = sld [smem:[#allocation6 + $0x7]] }
  0x9a   :  { %s5172_s30 = smov (!%p133_p6, %s4541_s30), 0  ;;  %s4567_s25 = sshll.u32 %s4387_s24, 4  ;;  %s4599_s25 = int_to_ptr.vmem [resolvable:$true] %s4567_s25 }
  0x9b   :  { %s5174_s30 = smov (!%p3385_p7, %s5172_s30), 746 }
  0x9c   :  { %p153_p10 = scmp.gt.s32.totalorder %s4558_s3, 0  ;;  %s3390_s26 = sshll.u32 %s5174_s30, 4 }
  0x9d   :  { %p173_p9 = scmp.gt.s32.totalorder %s4560_s22, 0  ;;  %s138_s17 = scalar_lea.hbm %s5150_s1, %s3390_s26 }
  0x9e   :  { %s4188_s18 = scalar_lea.hbm %s138_s17, 16  ;;  %p4191_p0 = scmp.lt.u32.totalorder %s138_s17, %s5150_s1 }
  0x9f   :  { %p4189_p11 = scmp.ne.s32.totalorder %s138_s17, %s4188_s18  ;;  %p4192_p1 = scmp.lt.u32.totalorder %s4487_s28, %s4188_s18 }
  0xa0   :  { %p4194_p2 = scmp.lt.u32.totalorder %s4188_s18, %s138_s17 }
  0xa1   :  { %p4193_p8 = por %p4192_p1, %p4191_p0 }
  0xa3   :  { %p4195_p3 = por %p4194_p2, %p4193_p8 }
  0xa5   :  { %p4196_p4 = pnand %p4195_p3, %p4189_p11 }
  0xa7   :  { %4199 = shalt.err (!%p4196_p4)  }
  0xa8   :  { %s4200_s30 = scalar_lea.vmem %s4546_s2, 16  ;;  %p4205_p6 = scmp.lt.s32.totalorder %s4546_s2, %s4470_s14 }
  0xa9   :  { %p4201_p5 = scmp.ne.s32.totalorder %s4546_s2, %s4200_s30  ;;  %p4206_p7 = scmp.lt.s32.totalorder %s4496_s9, %s4200_s30 }
  0xab   :  { %p4207_p13 = por %p4206_p7, %p4205_p6 }
  0xad   :  { %p4208_p12 = pnand %p4207_p13, %p4201_p5 }
  0xaf   :  { %4211 = shalt.err (!%p4208_p12)  }
  0xb0   :  { %151 = dma.hbm_to_vmem [thread:$0]  %s138_s17, 16, %s4546_s2, [#allocation4 + $0x4] }
  0xb1   :  { %s154_s11 = scalar_select %p153_p10, %s4558_s3, 0 }
  0xb2   :  { %s174_s12 = scalar_select %p173_p9, %s4560_s22, 0 }
  0xb3   :  { %p5157_p11 = scmp.lt.s32.totalorder %s4558_s3, 746  ;;  %p5158_p0 = scmp.lt.s32.totalorder %s4560_s22, 746 }
  0xb5   :  { %s5176_s11 = smov (!%p5157_p11, %s154_s11), 746  ;;  %s5178_s12 = smov (!%p5158_p0, %s174_s12), 746 }
  0xb6   :  { %s3397_s13 = sshll.u32 %s5176_s11, 4  ;;  %s3404_s19 = sshll.u32 %s5178_s12, 4 }
  0xb7   :  { %s158_s0 = scalar_lea.hbm %s5150_s1, %s3397_s13 }
  0xb8   :  { %s4212_s20 = scalar_lea.hbm %s158_s0, 16  ;;  %p4215_p10 = scmp.lt.u32.totalorder %s158_s0, %s5150_s1 }
  0xb9   :  { %p4213_p12 = scmp.ne.s32.totalorder %s158_s0, %s4212_s20  ;;  %p4216_p13 = scmp.lt.u32.totalorder %s4487_s28, %s4212_s20 }
  0xba   :  { %p4218_p1 = scmp.lt.u32.totalorder %s4212_s20, %s158_s0 }
  0xbb   :  { %p4217_p9 = por %p4216_p13, %p4215_p10 }
  0xbd   :  { %p4219_p8 = por %p4218_p1, %p4217_p9 }
  0xbf   :  { %p4220_p2 = pnand %p4219_p8, %p4213_p12 }
  0xc1   :  { %4223 = shalt.err (!%p4220_p2)  }
  0xc2   :  { %s4224_s3 = scalar_lea.vmem %s4564_s21, 16  ;;  %p4229_p4 = scmp.lt.s32.totalorder %s4564_s21, %s4470_s14 }
  0xc3   :  { %p4225_p3 = scmp.ne.s32.totalorder %s4564_s21, %s4224_s3  ;;  %p4230_p5 = scmp.lt.s32.totalorder %s4496_s9, %s4224_s3 }
  0xc5   :  { %p4231_p6 = por %p4230_p5, %p4229_p4 }
  0xc7   :  { %p4232_p7 = pnand %p4231_p6, %p4225_p3 }
  0xc9   :  { %4235 = shalt.err (!%p4232_p7)  }
  0xca   :  { %171 = dma.hbm_to_vmem [thread:$0]  %s158_s0, 16, %s4564_s21, [#allocation4 + $0x5] }
  0xcb   :  { %s178_s27 = scalar_lea.hbm %s5150_s1, %s3404_s19  ;;  %p193_p11 = scmp.gt.s32.totalorder %s4569_s23, 0 }
  0xcc   :  { %s4236_s29 = scalar_lea.hbm %s178_s27, 16  ;;  %p4239_p12 = scmp.lt.u32.totalorder %s178_s27, %s5150_s1 }
  0xcd   :  { %p4237_p0 = scmp.ne.s32.totalorder %s178_s27, %s4236_s29  ;;  %p4240_p10 = scmp.lt.u32.totalorder %s4487_s28, %s4236_s29 }
  0xce   :  { %p4242_p9 = scmp.lt.u32.totalorder %s4236_s29, %s178_s27 }
  0xcf   :  { %p4241_p13 = por %p4240_p10, %p4239_p12 }
  0xd1   :  { %p4243_p1 = por %p4242_p9, %p4241_p13 }
  0xd3   :  { %p4244_p8 = pnand %p4243_p1, %p4237_p0 }
  0xd5   :  { %4247 = shalt.err (!%p4244_p8)  }
  0xd6   :  { %s4248_s21 = scalar_lea.vmem %s4599_s25, 16  ;;  %p4253_p3 = scmp.lt.s32.totalorder %s4599_s25, %s4470_s14 }
  0xd7   :  { %p4249_p2 = scmp.ne.s32.totalorder %s4599_s25, %s4248_s21  ;;  %p4254_p4 = scmp.lt.s32.totalorder %s4496_s9, %s4248_s21 }
  0xd9   :  { %p4255_p5 = por %p4254_p4, %p4253_p3 }
  0xdb   :  { %p4256_p6 = pnand %p4255_p5, %p4249_p2 }
  0xdd   :  { %4259 = shalt.err (!%p4256_p6)  }
  0xde   :  { %191 = dma.hbm_to_vmem [thread:$0]  %s178_s27, 16, %s4599_s25, [#allocation4 + $0x6] }
  0xdf   :  { %s194_s8 = scalar_select %p193_p11, %s4569_s23, 0 }
  0xe0   :  { %p3406_p7 = scmp.lt.s32.totalorder %s4569_s23, 746  ;;  %s4388_s10 = smov [#allocation2 + $0x7]  }
  0xe1   :  { %s208_s30 = sshll.u32 %s4388_s10, 4  ;;  %s209_s30 = int_to_ptr.vmem [resolvable:$true] %s208_s30 }
  0xe2   :  { %s5180_s8 = smov (!%p3406_p7, %s194_s8), 746 }
  0xe3   :  { %s3411_s11 = sshll.u32 %s5180_s8, 4 }
  0xe4   :  { %s198_s15 = scalar_lea.hbm %s5150_s1, %s3411_s11 }
  0xe5   :  { %s4260_s16 = scalar_lea.hbm %s198_s15, 16  ;;  %p4263_p12 = scmp.lt.u32.totalorder %s198_s15, %s5150_s1 }
  0xe6   :  { %p4261_p0 = scmp.ne.s32.totalorder %s198_s15, %s4260_s16  ;;  %p4264_p10 = scmp.lt.u32.totalorder %s4487_s28, %s4260_s16 }
  0xe7   :  { %p4266_p9 = scmp.lt.u32.totalorder %s4260_s16, %s198_s15 }
  0xe8   :  { %p4265_p13 = por %p4264_p10, %p4263_p12 }
  0xea   :  { %p4267_p11 = por %p4266_p9, %p4265_p13 }
  0xec   :  { %p4268_p1 = pnand %p4267_p11, %p4261_p0 }
  0xee   :  { %4271 = shalt.err (!%p4268_p1)  }
  0xef   :  { %s4272_s25 = scalar_lea.vmem %s209_s30, 16  ;;  %p4277_p2 = scmp.lt.s32.totalorder %s209_s30, %s4470_s14 }
  0xf0   :  { %p4273_p8 = scmp.ne.s32.totalorder %s209_s30, %s4272_s25  ;;  %p4278_p3 = scmp.lt.s32.totalorder %s4496_s9, %s4272_s25 }
  0xf2   :  { %p4279_p4 = por %p4278_p3, %p4277_p2 }
  0xf4   :  { %p4280_p5 = pnand %p4279_p4, %p4273_p8 }
  0xf6   :  { %4283 = shalt.err (!%p4280_p5)  }
  0xf7   :  { %211 = dma.hbm_to_vmem [thread:$0]  %s198_s15, 16, %s209_s30, [#allocation4 + $0x7] }
  0xf8   :  { %4356 = dma.done.wait [#allocation4], 16 }
  0xf9   :  { %4357 = vsyncadd [#allocation4], 4294967280 }
  0xfa   :  { %4358 = dma.done.wait [#allocation4 + $0x1], 16 }
  0xfb   :  { %4359 = vsyncadd [#allocation4 + $0x1], 4294967280 }
  0xfc   :  { %4360 = dma.done.wait [#allocation4 + $0x2], 16 }
  0xfd   :  { %4361 = vsyncadd [#allocation4 + $0x2], 4294967280 }
  0xfe   :  { %4362 = dma.done.wait [#allocation4 + $0x3], 16 }
  0xff   :  { %4363 = vsyncadd [#allocation4 + $0x3], 4294967280 }
 0x100   :  { %4364 = dma.done.wait [#allocation4 + $0x4], 16 }
 0x101   :  { %4365 = vsyncadd [#allocation4 + $0x4], 4294967280 }
 0x102   :  { %4366 = dma.done.wait [#allocation4 + $0x5], 16 }
 0x103   :  { %4367 = vsyncadd [#allocation4 + $0x5], 4294967280 }
 0x104   :  { %4368 = dma.done.wait [#allocation4 + $0x6], 16 }
 0x105   :  { %4369 = vsyncadd [#allocation4 + $0x6], 4294967280 }
 0x106   :  { %4370 = dma.done.wait [#allocation4 + $0x7], 16 }
 0x107   :  { %4371 = vsyncadd [#allocation4 + $0x7], 4294967280  ;;  %v4389_v0 = vmov 0   ;;  %v3766_v1 = vld [vmem:[#allocation7 + $0x4] ss:$16 sps:$4 sm:$0xff]   ;;  %v229_v33 = vld [vmem:[#allocation2] sm:$0xff] }
 0x108   :  { %477 = vmatprep.mubr.bf16.mxu0 %v4389_v0  ;;  %518 = vmatprep.mubr.bf16.mxu1 %v4389_v0  ;;  %v3768_v2 = vld [vmem:[#allocation7 + $0xc] ss:$16 sps:$4 sm:$0xff]   ;;  %v3770_v3 = vld [vmem:[#allocation7] ss:$16 sps:$4 sm:$0xff]   ;;  %v3771_v4 = vld [vmem:[#allocation7 + $0x8] ss:$16 sps:$4 sm:$0xff]   ;;  %v230_v36 = vpack.c.bf16 %v229_v33, %v229_v33 }
 0x109   :  { %445 = vmatprep.subr.bf16.mxu0 %v3766_v1  ;;  %486 = vmatprep.subr.bf16.mxu1 %v3768_v2  ;;  %v3772_v5 = vld [vmem:[#allocation7 + $0x24] ss:$16 sps:$4 sm:$0xff]   ;;  %v3774_v6 = vld [vmem:[#allocation7 + $0x2c] ss:$16 sps:$4 sm:$0xff]   ;;  %v3776_v7 = vld [vmem:[#allocation7 + $0x20] ss:$16 sps:$4 sm:$0xff]  }
 0x10a   :  { %446 = vmatpush1.bf16.msra.mxu0 %v3770_v3  ;;  %487 = vmatpush1.bf16.msra.mxu1 %v3771_v4  ;;  %v3777_v8 = vld [vmem:[#allocation7 + $0x28] ss:$16 sps:$4 sm:$0xff]   ;;  %v3778_v9 = vld [vmem:[#allocation7 + $0x44] ss:$16 sps:$4 sm:$0xff]   ;;  %v3780_v10 = vld [vmem:[#allocation7 + $0x4c] ss:$16 sps:$4 sm:$0xff]   ;;  %v265_v4 = vlaneseq }
 0x10b   :  { %447 = vmatprep.subr.bf16.mxu0 %v3772_v5  ;;  %488 = vmatprep.subr.bf16.mxu1 %v3774_v6  ;;  %v3782_v11 = vld [vmem:[#allocation7 + $0x40] ss:$16 sps:$4 sm:$0xff]   ;;  %v3783_v12 = vld [vmem:[#allocation7 + $0x48] ss:$16 sps:$4 sm:$0xff]   ;;  %v3784_v13 = vld [vmem:[#allocation7 + $0x64] ss:$16 sps:$4 sm:$0xff]  }
 0x10c   :  { %v3786_v14 = vld [vmem:[#allocation7 + $0x6c] ss:$16 sps:$4 sm:$0xff]   ;;  %v3788_v15 = vld [vmem:[#allocation7 + $0x60] ss:$16 sps:$4 sm:$0xff]   ;;  %v3789_v16 = vld [vmem:[#allocation7 + $0x68] ss:$16 sps:$4 sm:$0xff]  }
 0x10d   :  { %v3790_v17 = vld [vmem:[#allocation7 + $0x84] ss:$16 sps:$4 sm:$0xff]   ;;  %v3792_v18 = vld [vmem:[#allocation7 + $0x8c] ss:$16 sps:$4 sm:$0xff]   ;;  %v3794_v19 = vld [vmem:[#allocation7 + $0x80] ss:$16 sps:$4 sm:$0xff]  }
 0x10e   :  { %448 = vmatpush1.bf16.msra.mxu0 %v3776_v7  ;;  %489 = vmatpush1.bf16.msra.mxu1 %v3777_v8  ;;  %v3795_v20 = vld [vmem:[#allocation7 + $0x88] ss:$16 sps:$4 sm:$0xff]   ;;  %v3796_v21 = vld [vmem:[#allocation7 + $0xa4] ss:$16 sps:$4 sm:$0xff]   ;;  %v3798_v22 = vld [vmem:[#allocation7 + $0xac] ss:$16 sps:$4 sm:$0xff]  }
 0x10f   :  { %449 = vmatprep.subr.bf16.mxu0 %v3778_v9  ;;  %490 = vmatprep.subr.bf16.mxu1 %v3780_v10  ;;  %v3800_v23 = vld [vmem:[#allocation7 + $0xa0] ss:$16 sps:$4 sm:$0xff]   ;;  %v3801_v24 = vld [vmem:[#allocation7 + $0xa8] ss:$16 sps:$4 sm:$0xff]   ;;  %v3802_v25 = vld [vmem:[#allocation7 + $0xc4] ss:$16 sps:$4 sm:$0xff]  }
 0x110   :  { %v3804_v26 = vld [vmem:[#allocation7 + $0xcc] ss:$16 sps:$4 sm:$0xff]   ;;  %v3806_v27 = vld [vmem:[#allocation7 + $0xc0] ss:$16 sps:$4 sm:$0xff]   ;;  %v3807_v28 = vld [vmem:[#allocation7 + $0xc8] ss:$16 sps:$4 sm:$0xff]  }
 0x111   :  { %v3808_v29 = vld [vmem:[#allocation7 + $0xe4] ss:$16 sps:$4 sm:$0xff]   ;;  %v3810_v30 = vld [vmem:[#allocation7 + $0xec] ss:$16 sps:$4 sm:$0xff]   ;;  %v3812_v31 = vld [vmem:[#allocation7 + $0xe0] ss:$16 sps:$4 sm:$0xff]  }
 0x112   :  { %450 = vmatpush1.bf16.msra.mxu0 %v3782_v11  ;;  %491 = vmatpush1.bf16.msra.mxu1 %v3783_v12  ;;  %v3813_v32 = vld [vmem:[#allocation7 + $0xe8] ss:$16 sps:$4 sm:$0xff]   ;;  %v4643_v34 = vld [vmem:[#allocation10 + $0x4] ss:$16 sps:$4 sm:$0xff]   ;;  %v4645_v35 = vld [vmem:[#allocation10 + $0xc] ss:$16 sps:$4 sm:$0xff]  }
 0x113   :  { %451 = vmatprep.subr.bf16.mxu0 %v3784_v13  ;;  %492 = vmatprep.subr.bf16.mxu1 %v3786_v14  ;;  %v4647_v37 = vld [vmem:[#allocation10] ss:$16 sps:$4 sm:$0xff]   ;;  %v4649_v38 = vld [vmem:[#allocation10 + $0x8] ss:$16 sps:$4 sm:$0xff]   ;;  %v4653_v39 = vld [vmem:[#allocation10 + $0x24] ss:$16 sps:$4 sm:$0xff]  }
 0x114   :  { %v4655_v40 = vld [vmem:[#allocation10 + $0x2c] ss:$16 sps:$4 sm:$0xff]   ;;  %v4657_v41 = vld [vmem:[#allocation10 + $0x20] ss:$16 sps:$4 sm:$0xff]   ;;  %v4661_v42 = vld [vmem:[#allocation10 + $0x28] ss:$16 sps:$4 sm:$0xff]  }
 0x115   :  { %v4665_v43 = vld [vmem:[#allocation10 + $0x44] ss:$16 sps:$4 sm:$0xff]   ;;  %v4667_v44 = vld [vmem:[#allocation10 + $0x4c] ss:$16 sps:$4 sm:$0xff]   ;;  %v4671_v45 = vld [vmem:[#allocation10 + $0x40] ss:$16 sps:$4 sm:$0xff]  }
 0x116   :  { %452 = vmatpush1.bf16.msra.mxu0 %v3788_v15  ;;  %493 = vmatpush1.bf16.msra.mxu1 %v3789_v16  ;;  %v4675_v46 = vld [vmem:[#allocation10 + $0x48] ss:$16 sps:$4 sm:$0xff]   ;;  %v4679_v47 = vld [vmem:[#allocation10 + $0x64] ss:$16 sps:$4 sm:$0xff]   ;;  %v4681_v48 = vld [vmem:[#allocation10 + $0x6c] ss:$16 sps:$4 sm:$0xff]  }
 0x117   :  { %453 = vmatprep.subr.bf16.mxu0 %v3790_v17  ;;  %494 = vmatprep.subr.bf16.mxu1 %v3792_v18  ;;  %v4683_v49 = vld [vmem:[#allocation10 + $0x60] ss:$16 sps:$4 sm:$0xff]   ;;  %v4685_v50 = vld [vmem:[#allocation10 + $0x68] ss:$16 sps:$4 sm:$0xff]   ;;  %v4687_v51 = vld [vmem:[#allocation10 + $0x84] ss:$16 sps:$4 sm:$0xff]  }
 0x118   :  { %v4689_v52 = vld [vmem:[#allocation10 + $0x8c] ss:$16 sps:$4 sm:$0xff]   ;;  %v4695_v53 = vld [vmem:[#allocation10 + $0x80] ss:$16 sps:$4 sm:$0xff]   ;;  %v4697_v54 = vld [vmem:[#allocation10 + $0x88] ss:$16 sps:$4 sm:$0xff]  }
 0x119   :  { %v4699_v55 = vld [vmem:[#allocation10 + $0xa4] ss:$16 sps:$4 sm:$0xff]   ;;  %v4701_v56 = vld [vmem:[#allocation10 + $0xac] ss:$16 sps:$4 sm:$0xff]   ;;  %v4707_v57 = vld [vmem:[#allocation10 + $0xa0] ss:$16 sps:$4 sm:$0xff]  }
 0x11a   :  { %454 = vmatpush1.bf16.msra.mxu0 %v3794_v19  ;;  %495 = vmatpush1.bf16.msra.mxu1 %v3795_v20  ;;  %v4709_v58 = vld [vmem:[#allocation10 + $0xa8] ss:$16 sps:$4 sm:$0xff]   ;;  %v4711_v59 = vld [vmem:[#allocation10 + $0xc4] ss:$16 sps:$4 sm:$0xff]   ;;  %v4713_v60 = vld [vmem:[#allocation10 + $0xcc] ss:$16 sps:$4 sm:$0xff]  }
 0x11b   :  { %455 = vmatprep.subr.bf16.mxu0 %v3796_v21  ;;  %496 = vmatprep.subr.bf16.mxu1 %v3798_v22  ;;  %v4721_v61 = vld [vmem:[#allocation10 + $0xc0] ss:$16 sps:$4 sm:$0xff]   ;;  %v4723_v62 = vld [vmem:[#allocation10 + $0xc8] ss:$16 sps:$4 sm:$0xff]   ;;  %v4727_v63 = vld [vmem:[#allocation10 + $0xe4] ss:$16 sps:$4 sm:$0xff]  }
 0x11c   :  { %v4729_v1 = vld [vmem:[#allocation10 + $0xec] ss:$16 sps:$4 sm:$0xff]   ;;  %v4733_v2 = vld [vmem:[#allocation10 + $0xe0] ss:$16 sps:$4 sm:$0xff]   ;;  %v4735_v3 = vld [vmem:[#allocation10 + $0xe8] ss:$16 sps:$4 sm:$0xff]  }
 0x11d   :  { %v266_v5 = vshrl.u32 %v265_v4, 7  ;;  %v263_v8 = vld [vmem:[%s5153_s4] sm:$0xf]  ;;  %s4391_s4 = smov [#allocation13]   ;;  %s4392_s9 = smov [#allocation12]  }
 0x11e   :  { %456 = vmatpush1.bf16.msra.mxu0 %v3800_v23  ;;  %497 = vmatpush1.bf16.msra.mxu1 %v3801_v24  ;;  %s3259_s28 = sshll.u32 %s4391_s4, 4  ;;  %s3249_s23 = sshll.u32 %s4392_s9, 4  ;;  %s3260_s28 = int_to_ptr.vmem [resolvable:$true] %s3259_s28  ;;  %s5098_s23 = int_to_ptr.vmem [resolvable:$true] %s3249_s23 }
 0x11f   :  { %457 = vmatprep.subr.bf16.mxu0 %v3802_v25  ;;  %498 = vmatprep.subr.bf16.mxu1 %v3804_v26  ;;  %v267_v6 = vsub.s32 0, %v266_v5  ;;  %v275_v7 = vsub.s32 2, %v266_v5  ;;  %v271_v9 = vsub.s32 1, %v266_v5  ;;  %v279_v10 = vsub.s32 3, %v266_v5  ;;  %s4393_s20 = smov [#allocation15]   ;;  %s4284_s2 = scalar_lea.vmem %s3260_s28, 16 }
 0x120   :  { %s3269_s24 = sshll.u32 %s4393_s20, 4  ;;  %p4285_p6 = scmp.ne.s32.totalorder %s3260_s28, %s4284_s2  ;;  %s5100_s24 = int_to_ptr.vmem [resolvable:$true] %s3269_s24 }
 0x121   :  { %v268_v11 = vrot.slane %v263_v8, %v267_v6  ;;  %v276_v12 = vrot.slane %v263_v8, %v275_v7  ;;  %v272_v13 = vrot.slane %v263_v8, %v271_v9  ;;  %v280_v14 = vrot.slane %v263_v8, %v279_v10  ;;  %s4288_s3 = scalar_lea.vmem %s3260_s28, 32  ;;  %p4289_p7 = scmp.lt.s32.totalorder %s3260_s28, %s3260_s28 }
 0x122   :  { %458 = vmatpush1.bf16.msra.mxu0 %v3806_v27  ;;  %499 = vmatpush1.bf16.msra.mxu1 %v3807_v28  ;;  %v4390_v27 = vmov 1966171168   ;;  %p4290_p0 = scmp.lt.s32.totalorder %s4288_s3, %s4284_s2 }
 0x123   :  { %459 = vmatprep.subr.bf16.mxu0 %v3808_v29  ;;  %500 = vmatprep.subr.bf16.mxu1 %v3810_v30  ;;  %v813_v28 = vunpack.c.l.s4 %v4390_v27 }
 0x124   :  { %p4291_p12 = por %p4290_p0, %p4289_p7 }
 0x125   :  { %v814_v29 = vunpack.c.0.s8 %v813_v28 }
 0x126   :  { %460 = vmatpush1.bf16.msra.mxu0 %v3812_v31  ;;  %501 = vmatpush1.bf16.msra.mxu1 %v3813_v32  ;;  %p4292_p10 = pnand %p4291_p12, %p4285_p6 }
 0x127   :  { %724 = vmatprep.subr.bf16.mxu0 %v4643_v34  ;;  %765 = vmatprep.subr.bf16.mxu1 %v4645_v35  ;;  %v4782_v30 = vsub.s32 %v814_v29, %v266_v5 }
 0x129   :  { %478 = vmatmul.mubr.bf16.vlgmr.msra.gmra.mrb[0].mxu0 %v230_v36  ;;  %519 = vmatmul.mubr.bf16.vlgmr.msra.gmra.mrb[0].mxu1 %v230_v36 }
 0x12a   :  { %725 = vmatpush1.bf16.msra.mxu0 %v4647_v37  ;;  %766 = vmatpush1.bf16.msra.mxu1 %v4649_v38 }
 0x12b   :  { %726 = vmatprep.subr.bf16.mxu0 %v4653_v39  ;;  %767 = vmatprep.subr.bf16.mxu1 %v4655_v40 }
 0x12c   :  { %756 = vmatprep.mubr.bf16.mxu0 %v4389_v0  ;;  %797 = vmatprep.mubr.bf16.mxu1 %v4389_v0 }
 0x12e   :  { %727 = vmatpush1.bf16.msra.mxu0 %v4657_v41  ;;  %768 = vmatpush1.bf16.msra.mxu1 %v4661_v42 }
 0x12f   :  { %728 = vmatprep.subr.bf16.mxu0 %v4665_v43  ;;  %769 = vmatprep.subr.bf16.mxu1 %v4667_v44 }
 0x132   :  { %729 = vmatpush1.bf16.msra.mxu0 %v4671_v45  ;;  %770 = vmatpush1.bf16.msra.mxu1 %v4675_v46 }
 0x133   :  { %730 = vmatprep.subr.bf16.mxu0 %v4679_v47  ;;  %771 = vmatprep.subr.bf16.mxu1 %v4681_v48 }
 0x136   :  { %731 = vmatpush1.bf16.msra.mxu0 %v4683_v49  ;;  %772 = vmatpush1.bf16.msra.mxu1 %v4685_v50 }
 0x137   :  { %732 = vmatprep.subr.bf16.mxu0 %v4687_v51  ;;  %773 = vmatprep.subr.bf16.mxu1 %v4689_v52 }
 0x13a   :  { %733 = vmatpush1.bf16.msra.mxu0 %v4695_v53  ;;  %774 = vmatpush1.bf16.msra.mxu1 %v4697_v54 }
 0x13b   :  { %734 = vmatprep.subr.bf16.mxu0 %v4699_v55  ;;  %775 = vmatprep.subr.bf16.mxu1 %v4701_v56 }
 0x13e   :  { %735 = vmatpush1.bf16.msra.mxu0 %v4707_v57  ;;  %776 = vmatpush1.bf16.msra.mxu1 %v4709_v58 }
 0x13f   :  { %736 = vmatprep.subr.bf16.mxu0 %v4711_v59  ;;  %777 = vmatprep.subr.bf16.mxu1 %v4713_v60 }
 0x142   :  { %737 = vmatpush1.bf16.msra.mxu0 %v4721_v61  ;;  %778 = vmatpush1.bf16.msra.mxu1 %v4723_v62 }
 0x143   :  { %738 = vmatprep.subr.bf16.mxu0 %v4727_v63  ;;  %779 = vmatprep.subr.bf16.mxu1 %v4729_v1 }
 0x146   :  { %739 = vmatpush1.bf16.msra.mxu0 %v4733_v2  ;;  %780 = vmatpush1.bf16.msra.mxu1 %v4735_v3 }
 0x147   :  { %1063 = vmatprep.subr.bf16.mxu0 %v4643_v34  ;;  %1104 = vmatprep.subr.bf16.mxu1 %v4645_v35 }
 0x149   :  { %757 = vmatmul.mubr.bf16.vlgmr.msra.gmra.mrb[4].mxu0 %v4389_v0  ;;  %798 = vmatmul.mubr.bf16.vlgmr.msra.gmra.mrb[4].mxu1 %v4389_v0 }
 0x14a   :  { %1064 = vmatpush1.bf16.msra.mxu0 %v4647_v37  ;;  %1105 = vmatpush1.bf16.msra.mxu1 %v4649_v38 }
 0x14b   :  { %1065 = vmatprep.subr.bf16.mxu0 %v4653_v39  ;;  %1106 = vmatprep.subr.bf16.mxu1 %v4655_v40 }
 0x14c   :  { %1095 = vmatprep.mubr.bf16.mxu0 %v4389_v0  ;;  %1136 = vmatprep.mubr.bf16.mxu1 %v4389_v0 }
 0x14e   :  { %1066 = vmatpush1.bf16.msra.mxu0 %v4657_v41  ;;  %1107 = vmatpush1.bf16.msra.mxu1 %v4661_v42 }
 0x14f   :  { %1067 = vmatprep.subr.bf16.mxu0 %v4665_v43  ;;  %1108 = vmatprep.subr.bf16.mxu1 %v4667_v44 }
 0x152   :  { %1068 = vmatpush1.bf16.msra.mxu0 %v4671_v45  ;;  %1109 = vmatpush1.bf16.msra.mxu1 %v4675_v46 }
 0x153   :  { %1069 = vmatprep.subr.bf16.mxu0 %v4679_v47  ;;  %1110 = vmatprep.subr.bf16.mxu1 %v4681_v48 }
 0x156   :  { %1070 = vmatpush1.bf16.msra.mxu0 %v4683_v49  ;;  %1111 = vmatpush1.bf16.msra.mxu1 %v4685_v50 }
 0x157   :  { %1071 = vmatprep.subr.bf16.mxu0 %v4687_v51  ;;  %1112 = vmatprep.subr.bf16.mxu1 %v4689_v52 }
 0x15a   :  { %1072 = vmatpush1.bf16.msra.mxu0 %v4695_v53  ;;  %1113 = vmatpush1.bf16.msra.mxu1 %v4697_v54 }
 0x15b   :  { %1073 = vmatprep.subr.bf16.mxu0 %v4699_v55  ;;  %1114 = vmatprep.subr.bf16.mxu1 %v4701_v56 }
 0x15e   :  { %1074 = vmatpush1.bf16.msra.mxu0 %v4707_v57  ;;  %1115 = vmatpush1.bf16.msra.mxu1 %v4709_v58 }
 0x15f   :  { %1075 = vmatprep.subr.bf16.mxu0 %v4711_v59  ;;  %1116 = vmatprep.subr.bf16.mxu1 %v4713_v60 }
 0x162   :  { %1076 = vmatpush1.bf16.msra.mxu0 %v4721_v61  ;;  %1117 = vmatpush1.bf16.msra.mxu1 %v4723_v62 }
 0x163   :  { %1077 = vmatprep.subr.bf16.mxu0 %v4727_v63  ;;  %1118 = vmatprep.subr.bf16.mxu1 %v4729_v1 }
 0x166   :  { %1078 = vmatpush1.bf16.msra.mxu0 %v4733_v2  ;;  %1119 = vmatpush1.bf16.msra.mxu1 %v4735_v3 }
 0x167   :  { %1402 = vmatprep.subr.bf16.mxu0 %v4643_v34  ;;  %1443 = vmatprep.subr.bf16.mxu1 %v4645_v35 }
 0x1fc   :  { %v479_v15 = vpop.f32.mrb[0].mxu0  ;;  %v520_v16 = vpop.f32.mrb[0].mxu1 }
 0x1fd   :  { %v480_v17 = vadd.f32 %v479_v15, %v268_v11  ;;  %v521_v18 = vadd.f32 %v520_v16, %v276_v12  ;;  %v481_v19 = vpop.f32.mrb[1].mxu0  ;;  %v522_v20 = vpop.f32.mrb[1].mxu1 }
 0x1fe   :  { %v482_v21 = vadd.f32 %v481_v19, %v272_v13  ;;  %v523_v22 = vadd.f32 %v522_v20, %v280_v14  ;;  %v483_v23 = vpop.f32.mrb[2].mxu0  ;;  %v524_v24 = vpop.f32.mrb[2].mxu1 }
 0x1ff   :  { %527 = vst [vmem:[#allocation3] sm:$0xff] %v480_v17  ;;  %529 = vst [vmem:[#allocation3 + $0x10] sm:$0xff] %v521_v18  ;;  %v484_v25 = vpop.f32.mrb[3].mxu0  ;;  %v525_v26 = vpop.f32.mrb[3].mxu1 }
 0x200   :  { %528 = vst [vmem:[#allocation3 + $0x8] sm:$0xff] %v482_v21  ;;  %530 = vst [vmem:[#allocation3 + $0x18] sm:$0xff] %v523_v22 }
 0x207   :  { %v531_v15 = vld [vmem:[#allocation3] ss:$8 sm:$0xf] }
 0x21c   :  { %v758_v31 = vpop.f32.mrb[4].mxu0  ;;  %v799_v32 = vpop.f32.mrb[4].mxu1 }
 0x21d   :  { %v760_v33 = vpop.f32.mrb[5].mxu0  ;;  %v801_v36 = vpop.f32.mrb[5].mxu1 }
 0x21e   :  { %v810_v4 = vcombine.low %v758_v31, %v760_v33  ;;  %v811_v6 = vcombine.low %v799_v32, %v801_v36  ;;  %v762_v7 = vpop.f32.mrb[6].mxu0  ;;  %v803_v8 = vpop.f32.mrb[6].mxu1 }
 0x21f   :  { %v763_v9 = vpop.f32.mrb[7].mxu0  ;;  %v804_v10 = vpop.f32.mrb[7].mxu1 }
 0x220   :  { %v818_v11 = vrot.slane %v810_v4, %v4782_v30  ;;  %v825_v12 = vrot.slane %v811_v6, %v4782_v30 }
 0x222   :  { %v826_v13 = vcombine.low %v818_v11, %v825_v12 }
 0x224   :  { %v833_v14 = vrot.slane %v826_v13, %v4782_v30 }
 0x226   :  { %v835_v5 = vadd.f32 %v833_v14, %v531_v15 }
 0x228   :  { %v3476_v16 = vmul.f32 -1.442695, %v835_v5  ;;  %v843_v17 = vrot.slane %v835_v5, 1  ;;  %v854_v19 = vrot.slane %v835_v5, 3  ;;  %v851_v22 = vrot.slane %v835_v5, 2 }
 0x22a   :  { %3910 = vpow2.f32 %v3476_v16  ;;  %v3477_v18 = vmul.f32 -1.442695, %v843_v17  ;;  %v3478_v20 = vmul.f32 -1.442695, %v854_v19 }
 0x22c   :  { %3912 = vpow2.f32 %v3477_v18 }
 0x22d   :  { %3914 = vpow2.f32 %v3478_v20 }
 0x234   :  { %v3911_v21 = vpop.eup %3910 }
 0x235   :  { %v839_v23 = vadd.f32 1.0, %v3911_v21 }
 0x236   :  { %v3913_v24 = vpop.eup %3912 }
 0x237   :  { %3916 = vrcp.f32 %v839_v23  ;;  %v848_v25 = vadd.f32 1.0, %v3913_v24  ;;  %v3915_v26 = vpop.eup %3914 }
 0x238   :  { %3918 = vtanh.f32 %v851_v22  ;;  %v859_v31 = vadd.f32 1.0, %v3915_v26 }
 0x239   :  { %3920 = vrcp.f32 %v848_v25 }
 0x23a   :  { %3922 = vrcp.f32 %v859_v31 }
 0x241   :  { %v3917_v27 = vpop.eup %3916 }
 0x242   :  { %v3919_v28 = vpop.eup %3918 }
 0x243   :  { %v3921_v29 = vpop.eup %3920  ;;  %v863_v33 = vmul.f32 %v3919_v28, %v3917_v27 }
 0x244   :  { %v862_v32 = vmul.f32 0.0, %v3921_v29  ;;  %v3923_v4 = vpop.eup %3922 }
 0x246   :  { %v4787_v36 = vadd.f32 %v863_v33, %v862_v32 }
 0x248   :  { %3924 = vtanh.f32 %v4787_v36 }
 0x252   :  { %v3925_v6 = vpop.eup %3924 }
 0x253   :  { %v866_v7 = vmul.f32 %v3925_v6, %v3923_v4 }
 0x255   :  { %867 = vst [vmem:[#allocation12] sm:$0x1] %v866_v7  ;;  %v870_v8 = vpack.c.bf16 %v866_v7, %v866_v7 }
 0x257   :  { %1096 = vmatmul.mubr.bf16.vlgmr.msra.gmra.mrb[8].mxu0 %v870_v8  ;;  %1137 = vmatmul.mubr.bf16.vlgmr.msra.gmra.mrb[8].mxu1 %v870_v8 }
 0x258   :  { %1403 = vmatpush1.bf16.msra.mxu0 %v4647_v37  ;;  %1444 = vmatpush1.bf16.msra.mxu1 %v4649_v38 }
 0x259   :  { %1404 = vmatprep.subr.bf16.mxu0 %v4653_v39  ;;  %1445 = vmatprep.subr.bf16.mxu1 %v4655_v40 }
 0x25a   :  { %1434 = vmatprep.mubr.bf16.mxu0 %v4389_v0  ;;  %1475 = vmatprep.mubr.bf16.mxu1 %v4389_v0 }
 0x25c   :  { %1405 = vmatpush1.bf16.msra.mxu0 %v4657_v41  ;;  %1446 = vmatpush1.bf16.msra.mxu1 %v4661_v42 }
 0x25d   :  { %1406 = vmatprep.subr.bf16.mxu0 %v4665_v43  ;;  %1447 = vmatprep.subr.bf16.mxu1 %v4667_v44 }
 0x260   :  { %1407 = vmatpush1.bf16.msra.mxu0 %v4671_v45  ;;  %1448 = vmatpush1.bf16.msra.mxu1 %v4675_v46 }
 0x261   :  { %1408 = vmatprep.subr.bf16.mxu0 %v4679_v47  ;;  %1449 = vmatprep.subr.bf16.mxu1 %v4681_v48 }
 0x264   :  { %1409 = vmatpush1.bf16.msra.mxu0 %v4683_v49  ;;  %1450 = vmatpush1.bf16.msra.mxu1 %v4685_v50 }
 0x265   :  { %1410 = vmatprep.subr.bf16.mxu0 %v4687_v51  ;;  %1451 = vmatprep.subr.bf16.mxu1 %v4689_v52 }
 0x268   :  { %1411 = vmatpush1.bf16.msra.mxu0 %v4695_v53  ;;  %1452 = vmatpush1.bf16.msra.mxu1 %v4697_v54 }
 0x269   :  { %1412 = vmatprep.subr.bf16.mxu0 %v4699_v55  ;;  %1453 = vmatprep.subr.bf16.mxu1 %v4701_v56 }
 0x26c   :  { %1413 = vmatpush1.bf16.msra.mxu0 %v4707_v57  ;;  %1454 = vmatpush1.bf16.msra.mxu1 %v4709_v58 }
 0x26d   :  { %1414 = vmatprep.subr.bf16.mxu0 %v4711_v59  ;;  %1455 = vmatprep.subr.bf16.mxu1 %v4713_v60 }
 0x270   :  { %1415 = vmatpush1.bf16.msra.mxu0 %v4721_v61  ;;  %1456 = vmatpush1.bf16.msra.mxu1 %v4723_v62 }
 0x271   :  { %1416 = vmatprep.subr.bf16.mxu0 %v4727_v63  ;;  %1457 = vmatprep.subr.bf16.mxu1 %v4729_v1 }
 0x274   :  { %1417 = vmatpush1.bf16.msra.mxu0 %v4733_v2  ;;  %1458 = vmatpush1.bf16.msra.mxu1 %v4735_v3 }
 0x275   :  { %1741 = vmatprep.subr.bf16.mxu0 %v4643_v34  ;;  %1782 = vmatprep.subr.bf16.mxu1 %v4645_v35  ;;  %v869_v34 = vld [vmem:[#allocation3 + $0x1] ss:$8 sm:$0xf] }
 0x32a   :  { %v1097_v9 = vpop.f32.mrb[8].mxu0  ;;  %v1138_v10 = vpop.f32.mrb[8].mxu1 }
 0x32b   :  { %v1099_v11 = vpop.f32.mrb[9].mxu0  ;;  %v1140_v12 = vpop.f32.mrb[9].mxu1 }
 0x32c   :  { %v1149_v13 = vcombine.low %v1097_v9, %v1099_v11  ;;  %v1150_v14 = vcombine.low %v1138_v10, %v1140_v12  ;;  %v1101_v15 = vpop.f32.mrb[10].mxu0  ;;  %v1142_v5 = vpop.f32.mrb[10].mxu1 }
 0x32d   :  { %v1102_v16 = vpop.f32.mrb[11].mxu0  ;;  %v1143_v17 = vpop.f32.mrb[11].mxu1 }
 0x32e   :  { %v1157_v18 = vrot.slane %v1149_v13, %v4782_v30  ;;  %v1164_v19 = vrot.slane %v1150_v14, %v4782_v30 }
 0x330   :  { %v1165_v20 = vcombine.low %v1157_v18, %v1164_v19 }
 0x332   :  { %v1172_v21 = vrot.slane %v1165_v20, %v4782_v30 }
 0x334   :  { %v1174_v22 = vadd.f32 %v1172_v21, %v869_v34  ;;  %v4872_v34 = vld [vmem:[#allocation10 + $0x4] ss:$16 sps:$4 sm:$0xff]  }
 0x336   :  { %v3511_v35 = vmul.f32 -1.442695, %v1174_v22  ;;  %v1182_v23 = vrot.slane %v1174_v22, 1  ;;  %v1193_v25 = vrot.slane %v1174_v22, 3  ;;  %v1190_v28 = vrot.slane %v1174_v22, 2 }
 0x337   :  { %v4874_v22 = vld [vmem:[#allocation10 + $0xc] ss:$16 sps:$4 sm:$0xff]  }
 0x338   :  { %3926 = vpow2.f32 %v3511_v35  ;;  %v3512_v24 = vmul.f32 -1.442695, %v1182_v23  ;;  %v3513_v26 = vmul.f32 -1.442695, %v1193_v25  ;;  %v4876_v35 = vld [vmem:[#allocation10] ss:$16 sps:$4 sm:$0xff]  }
 0x339   :  { %v4878_v23 = vld [vmem:[#allocation10 + $0x8] ss:$16 sps:$4 sm:$0xff]   ;;  %v4886_v25 = vld [vmem:[#allocation10 + $0x24] ss:$16 sps:$4 sm:$0xff]  }
 0x33a   :  { %3928 = vpow2.f32 %v3512_v24  ;;  %v4884_v24 = vld [vmem:[#allocation10 + $0x20] ss:$16 sps:$4 sm:$0xff]  }
 0x33b   :  { %3930 = vpow2.f32 %v3513_v26  ;;  %v4888_v26 = vld [vmem:[#allocation10 + $0x28] ss:$16 sps:$4 sm:$0xff]  }
 0x342   :  { %v3927_v27 = vpop.eup %3926 }
 0x343   :  { %v1178_v29 = vadd.f32 1.0, %v3927_v27  ;;  %v4890_v27 = vld [vmem:[#allocation10 + $0x2c] ss:$16 sps:$4 sm:$0xff]  }
 0x344   :  { %v3929_v31 = vpop.eup %3928 }
 0x345   :  { %3932 = vrcp.f32 %v1178_v29  ;;  %v1187_v32 = vadd.f32 1.0, %v3929_v31  ;;  %v3931_v33 = vpop.eup %3930  ;;  %v4895_v29 = vld [vmem:[#allocation10 + $0x4c] ss:$16 sps:$4 sm:$0xff]   ;;  %v4900_v31 = vld [vmem:[#allocation10 + $0x40] ss:$16 sps:$4 sm:$0xff]  }
 0x346   :  { %3934 = vtanh.f32 %v1190_v28  ;;  %v1198_v8 = vadd.f32 1.0, %v3931_v33  ;;  %v4892_v28 = vld [vmem:[#allocation10 + $0x44] ss:$16 sps:$4 sm:$0xff]  }
 0x347   :  { %3936 = vrcp.f32 %v1187_v32  ;;  %v4902_v32 = vld [vmem:[#allocation10 + $0x48] ss:$16 sps:$4 sm:$0xff]   ;;  %v4906_v33 = vld [vmem:[#allocation10 + $0x64] ss:$16 sps:$4 sm:$0xff]  }
 0x348   :  { %3938 = vrcp.f32 %v1198_v8  ;;  %v4918_v8 = vld [vmem:[#allocation10 + $0x84] ss:$16 sps:$4 sm:$0xff]  }
 0x34f   :  { %v3933_v4 = vpop.eup %3932 }
 0x350   :  { %v3935_v6 = vpop.eup %3934 }
 0x351   :  { %v3937_v7 = vpop.eup %3936  ;;  %v1202_v10 = vmul.f32 %v3935_v6, %v3933_v4  ;;  %v4908_v4 = vld [vmem:[#allocation10 + $0x6c] ss:$16 sps:$4 sm:$0xff]   ;;  %v4912_v6 = vld [vmem:[#allocation10 + $0x60] ss:$16 sps:$4 sm:$0xff]  }
 0x352   :  { %v1201_v9 = vmul.f32 %v3937_v7, %v4787_v36  ;;  %v3939_v12 = vpop.eup %3938  ;;  %v4914_v7 = vld [vmem:[#allocation10 + $0x68] ss:$16 sps:$4 sm:$0xff]  }
 0x354   :  { %v4828_v11 = vadd.f32 %v1202_v10, %v1201_v9  ;;  %v4920_v9 = vld [vmem:[#allocation10 + $0x8c] ss:$16 sps:$4 sm:$0xff]   ;;  %v4924_v10 = vld [vmem:[#allocation10 + $0x80] ss:$16 sps:$4 sm:$0xff]  }
 0x356   :  { %3940 = vtanh.f32 %v4828_v11 }
 0x360   :  { %v3941_v13 = vpop.eup %3940 }
 0x361   :  { %v1205_v14 = vmul.f32 %v3941_v13, %v3939_v12  ;;  %v4930_v12 = vld [vmem:[#allocation10 + $0xa4] ss:$16 sps:$4 sm:$0xff]   ;;  %v4932_v13 = vld [vmem:[#allocation10 + $0xac] ss:$16 sps:$4 sm:$0xff]  }
 0x363   :  { %1206 = vst [vmem:[#allocation12 + $0x1] sm:$0x1] %v1205_v14  ;;  %v1209_v15 = vpack.c.bf16 %v1205_v14, %v1205_v14  ;;  %v4936_v14 = vld [vmem:[#allocation10 + $0xa0] ss:$16 sps:$4 sm:$0xff]  }
 0x365   :  { %1435 = vmatmul.mubr.bf16.vlgmr.msra.gmra.mrb[12].mxu0 %v1209_v15  ;;  %1476 = vmatmul.mubr.bf16.vlgmr.msra.gmra.mrb[12].mxu1 %v1209_v15  ;;  %v4938_v15 = vld [vmem:[#allocation10 + $0xa8] ss:$16 sps:$4 sm:$0xff]  }
 0x366   :  { %1742 = vmatpush1.bf16.msra.mxu0 %v4647_v37  ;;  %1783 = vmatpush1.bf16.msra.mxu1 %v4649_v38 }
 0x367   :  { %1743 = vmatprep.subr.bf16.mxu0 %v4653_v39  ;;  %1784 = vmatprep.subr.bf16.mxu1 %v4655_v40 }
 0x368   :  { %1773 = vmatprep.mubr.bf16.mxu0 %v4389_v0  ;;  %1814 = vmatprep.mubr.bf16.mxu1 %v4389_v0 }
 0x36a   :  { %1744 = vmatpush1.bf16.msra.mxu0 %v4657_v41  ;;  %1785 = vmatpush1.bf16.msra.mxu1 %v4661_v42 }
 0x36b   :  { %1745 = vmatprep.subr.bf16.mxu0 %v4665_v43  ;;  %1786 = vmatprep.subr.bf16.mxu1 %v4667_v44 }
 0x36e   :  { %1746 = vmatpush1.bf16.msra.mxu0 %v4671_v45  ;;  %1787 = vmatpush1.bf16.msra.mxu1 %v4675_v46 }
 0x36f   :  { %1747 = vmatprep.subr.bf16.mxu0 %v4679_v47  ;;  %1788 = vmatprep.subr.bf16.mxu1 %v4681_v48 }
 0x372   :  { %1748 = vmatpush1.bf16.msra.mxu0 %v4683_v49  ;;  %1789 = vmatpush1.bf16.msra.mxu1 %v4685_v50 }
 0x373   :  { %1749 = vmatprep.subr.bf16.mxu0 %v4687_v51  ;;  %1790 = vmatprep.subr.bf16.mxu1 %v4689_v52  ;;  %v1208_v51 = vld [vmem:[#allocation3 + $0x2] ss:$8 sm:$0xf] }
 0x376   :  { %1750 = vmatpush1.bf16.msra.mxu0 %v4695_v53  ;;  %1791 = vmatpush1.bf16.msra.mxu1 %v4697_v54 }
 0x377   :  { %1751 = vmatprep.subr.bf16.mxu0 %v4699_v55  ;;  %1792 = vmatprep.subr.bf16.mxu1 %v4701_v56 }
 0x37a   :  { %1752 = vmatpush1.bf16.msra.mxu0 %v4707_v57  ;;  %1793 = vmatpush1.bf16.msra.mxu1 %v4709_v58 }
 0x37b   :  { %1753 = vmatprep.subr.bf16.mxu0 %v4711_v59  ;;  %1794 = vmatprep.subr.bf16.mxu1 %v4713_v60 }
 0x37e   :  { %1754 = vmatpush1.bf16.msra.mxu0 %v4721_v61  ;;  %1795 = vmatpush1.bf16.msra.mxu1 %v4723_v62 }
 0x37f   :  { %1755 = vmatprep.subr.bf16.mxu0 %v4727_v63  ;;  %1796 = vmatprep.subr.bf16.mxu1 %v4729_v1 }
 0x382   :  { %1756 = vmatpush1.bf16.msra.mxu0 %v4733_v2  ;;  %1797 = vmatpush1.bf16.msra.mxu1 %v4735_v3 }
 0x383   :  { %2080 = vmatprep.subr.bf16.mxu0 %v4872_v34  ;;  %2121 = vmatprep.subr.bf16.mxu1 %v4874_v22 }
 0x438   :  { %v1436_v37 = vpop.f32.mrb[12].mxu0  ;;  %v1477_v38 = vpop.f32.mrb[12].mxu1 }
 0x439   :  { %v1438_v39 = vpop.f32.mrb[13].mxu0  ;;  %v1479_v40 = vpop.f32.mrb[13].mxu1 }
 0x43a   :  { %v1488_v41 = vcombine.low %v1436_v37, %v1438_v39  ;;  %v1489_v42 = vcombine.low %v1477_v38, %v1479_v40  ;;  %v1440_v43 = vpop.f32.mrb[14].mxu0  ;;  %v1481_v44 = vpop.f32.mrb[14].mxu1  ;;  %v4942_v37 = vld [vmem:[#allocation10 + $0xc4] ss:$16 sps:$4 sm:$0xff]   ;;  %v4944_v38 = vld [vmem:[#allocation10 + $0xcc] ss:$16 sps:$4 sm:$0xff]  }
 0x43b   :  { %v1441_v45 = vpop.f32.mrb[15].mxu0  ;;  %v1482_v46 = vpop.f32.mrb[15].mxu1  ;;  %v4948_v39 = vld [vmem:[#allocation10 + $0xc0] ss:$16 sps:$4 sm:$0xff]   ;;  %v4950_v40 = vld [vmem:[#allocation10 + $0xc8] ss:$16 sps:$4 sm:$0xff]  }
 0x43c   :  { %v1496_v47 = vrot.slane %v1488_v41, %v4782_v30  ;;  %v1503_v48 = vrot.slane %v1489_v42, %v4782_v30  ;;  %v4954_v41 = vld [vmem:[#allocation10 + $0xe4] ss:$16 sps:$4 sm:$0xff]   ;;  %v4956_v42 = vld [vmem:[#allocation10 + $0xec] ss:$16 sps:$4 sm:$0xff]   ;;  %v4960_v43 = vld [vmem:[#allocation10 + $0xe0] ss:$16 sps:$4 sm:$0xff]  }
 0x43d   :  { %v4962_v44 = vld [vmem:[#allocation10 + $0xe8] ss:$16 sps:$4 sm:$0xff]  }
 0x43e   :  { %v1504_v49 = vcombine.low %v1496_v47, %v1503_v48 }
 0x440   :  { %v1511_v50 = vrot.slane %v1504_v49, %v4782_v30 }
 0x442   :  { %v1513_v52 = vadd.f32 %v1511_v50, %v1208_v51 }
 0x444   :  { %v3546_v53 = vmul.f32 -1.442695, %v1513_v52  ;;  %v1521_v54 = vrot.slane %v1513_v52, 1  ;;  %v1532_v56 = vrot.slane %v1513_v52, 3  ;;  %v1529_v59 = vrot.slane %v1513_v52, 2 }
 0x446   :  { %3942 = vpow2.f32 %v3546_v53  ;;  %v3547_v55 = vmul.f32 -1.442695, %v1521_v54  ;;  %v3548_v57 = vmul.f32 -1.442695, %v1532_v56 }
 0x448   :  { %3944 = vpow2.f32 %v3547_v55 }
 0x449   :  { %3946 = vpow2.f32 %v3548_v57 }
 0x450   :  { %v3943_v58 = vpop.eup %3942 }
 0x451   :  { %v1517_v60 = vadd.f32 1.0, %v3943_v58 }
 0x452   :  { %v3945_v61 = vpop.eup %3944 }
 0x453   :  { %3948 = vrcp.f32 %v1517_v60  ;;  %v1526_v62 = vadd.f32 1.0, %v3945_v61  ;;  %v3947_v63 = vpop.eup %3946 }
 0x454   :  { %3950 = vtanh.f32 %v1529_v59  ;;  %v1537_v36 = vadd.f32 1.0, %v3947_v63  ;;  %v1547_v59 = vld [vmem:[#allocation3 + $0x3] ss:$8 sm:$0xf] }
 0x455   :  { %3952 = vrcp.f32 %v1526_v62 }
 0x456   :  { %3954 = vrcp.f32 %v1537_v36 }
 0x45d   :  { %v3949_v1 = vpop.eup %3948 }
 0x45e   :  { %v3951_v2 = vpop.eup %3950 }
 0x45f   :  { %v3953_v3 = vpop.eup %3952  ;;  %v1541_v16 = vmul.f32 %v3951_v2, %v3949_v1 }
 0x460   :  { %v1540_v5 = vmul.f32 %v3953_v3, %v4828_v11  ;;  %v3955_v18 = vpop.eup %3954  ;;  %v4926_v11 = vld [vmem:[#allocation10 + $0x88] ss:$16 sps:$4 sm:$0xff]  }
 0x462   :  { %v4867_v17 = vadd.f32 %v1541_v16, %v1540_v5 }
 0x464   :  { %3956 = vtanh.f32 %v4867_v17 }
 0x46e   :  { %v3957_v19 = vpop.eup %3956 }
 0x46f   :  { %v1544_v20 = vmul.f32 %v3957_v19, %v3955_v18 }
 0x471   :  { %1545 = vst [vmem:[#allocation12 + $0x2] sm:$0x1] %v1544_v20  ;;  %v1548_v21 = vpack.c.bf16 %v1544_v20, %v1544_v20 }
 0x473   :  { %1774 = vmatmul.mubr.bf16.vlgmr.msra.gmra.mrb[16].mxu0 %v1548_v21  ;;  %1815 = vmatmul.mubr.bf16.vlgmr.msra.gmra.mrb[16].mxu1 %v1548_v21 }
 0x474   :  { %2112 = vmatprep.mubr.bf16.mxu0 %v4389_v0  ;;  %2153 = vmatprep.mubr.bf16.mxu1 %v4389_v0 }
 0x475   :  { %2081 = vmatpush1.bf16.msra.mxu0 %v4876_v35  ;;  %2122 = vmatpush1.bf16.msra.mxu1 %v4878_v23 }
 0x476   :  { %2082 = vmatprep.subr.bf16.mxu0 %v4886_v25  ;;  %2123 = vmatprep.subr.bf16.mxu1 %v4890_v27 }
 0x479   :  { %2083 = vmatpush1.bf16.msra.mxu0 %v4884_v24  ;;  %2124 = vmatpush1.bf16.msra.mxu1 %v4888_v26 }
 0x47a   :  { %2084 = vmatprep.subr.bf16.mxu0 %v4892_v28  ;;  %2125 = vmatprep.subr.bf16.mxu1 %v4895_v29 }
 0x47d   :  { %2085 = vmatpush1.bf16.msra.mxu0 %v4900_v31  ;;  %2126 = vmatpush1.bf16.msra.mxu1 %v4902_v32 }
 0x47e   :  { %2086 = vmatprep.subr.bf16.mxu0 %v4906_v33  ;;  %2127 = vmatprep.subr.bf16.mxu1 %v4908_v4 }
 0x481   :  { %2087 = vmatpush1.bf16.msra.mxu0 %v4912_v6  ;;  %2128 = vmatpush1.bf16.msra.mxu1 %v4914_v7 }
 0x482   :  { %2088 = vmatprep.subr.bf16.mxu0 %v4918_v8  ;;  %2129 = vmatprep.subr.bf16.mxu1 %v4920_v9 }
 0x485   :  { %2089 = vmatpush1.bf16.msra.mxu0 %v4924_v10  ;;  %2130 = vmatpush1.bf16.msra.mxu1 %v4926_v11 }
 0x486   :  { %2090 = vmatprep.subr.bf16.mxu0 %v4930_v12  ;;  %2131 = vmatprep.subr.bf16.mxu1 %v4932_v13 }
 0x489   :  { %2091 = vmatpush1.bf16.msra.mxu0 %v4936_v14  ;;  %2132 = vmatpush1.bf16.msra.mxu1 %v4938_v15 }
 0x48a   :  { %2092 = vmatprep.subr.bf16.mxu0 %v4942_v37  ;;  %2133 = vmatprep.subr.bf16.mxu1 %v4944_v38 }
 0x48d   :  { %2093 = vmatpush1.bf16.msra.mxu0 %v4948_v39  ;;  %2134 = vmatpush1.bf16.msra.mxu1 %v4950_v40 }
 0x48e   :  { %2094 = vmatprep.subr.bf16.mxu0 %v4954_v41  ;;  %2135 = vmatprep.subr.bf16.mxu1 %v4956_v42 }
 0x491   :  { %2095 = vmatpush1.bf16.msra.mxu0 %v4960_v43  ;;  %2136 = vmatpush1.bf16.msra.mxu1 %v4962_v44 }
 0x492   :  { %2419 = vmatprep.subr.bf16.mxu0 %v4872_v34  ;;  %2460 = vmatprep.subr.bf16.mxu1 %v4874_v22 }
 0x546   :  { %v1775_v45 = vpop.f32.mrb[16].mxu0  ;;  %v1816_v46 = vpop.f32.mrb[16].mxu1 }
 0x547   :  { %v1777_v47 = vpop.f32.mrb[17].mxu0  ;;  %v1818_v48 = vpop.f32.mrb[17].mxu1 }
 0x548   :  { %v1827_v49 = vcombine.low %v1775_v45, %v1777_v47  ;;  %v1828_v50 = vcombine.low %v1816_v46, %v1818_v48  ;;  %v1779_v51 = vpop.f32.mrb[18].mxu0  ;;  %v1820_v52 = vpop.f32.mrb[18].mxu1 }
 0x549   :  { %v1780_v53 = vpop.f32.mrb[19].mxu0  ;;  %v1821_v54 = vpop.f32.mrb[19].mxu1 }
 0x54a   :  { %v1835_v55 = vrot.slane %v1827_v49, %v4782_v30  ;;  %v1842_v56 = vrot.slane %v1828_v50, %v4782_v30 }
 0x54c   :  { %v1843_v57 = vcombine.low %v1835_v55, %v1842_v56 }
 0x54e   :  { %v1850_v58 = vrot.slane %v1843_v57, %v4782_v30 }
 0x550   :  { %v1852_v60 = vadd.f32 %v1850_v58, %v1547_v59 }
 0x552   :  { %v3581_v61 = vmul.f32 -1.442695, %v1852_v60  ;;  %v1860_v62 = vrot.slane %v1852_v60, 1  ;;  %v1871_v1 = vrot.slane %v1852_v60, 3  ;;  %v1868_v36 = vrot.slane %v1852_v60, 2 }
 0x554   :  { %3958 = vpow2.f32 %v3581_v61  ;;  %v3582_v63 = vmul.f32 -1.442695, %v1860_v62  ;;  %v3583_v2 = vmul.f32 -1.442695, %v1871_v1 }
 0x556   :  { %3960 = vpow2.f32 %v3582_v63 }
 0x557   :  { %3962 = vpow2.f32 %v3583_v2 }
 0x55e   :  { %v3959_v3 = vpop.eup %3958 }
 0x55f   :  { %v1856_v5 = vadd.f32 1.0, %v3959_v3 }
 0x560   :  { %v3961_v16 = vpop.eup %3960 }
 0x561   :  { %3964 = vrcp.f32 %v1856_v5  ;;  %v1865_v18 = vadd.f32 1.0, %v3961_v16  ;;  %v3963_v19 = vpop.eup %3962 }
 0x562   :  { %3966 = vtanh.f32 %v1868_v36  ;;  %v1876_v46 = vadd.f32 1.0, %v3963_v19  ;;  %v1886_v36 = vld [vmem:[#allocation3 + $0x4] ss:$8 sm:$0xf] }
 0x563   :  { %3968 = vrcp.f32 %v1865_v18 }
 0x564   :  { %3970 = vrcp.f32 %v1876_v46 }
 0x56b   :  { %v3965_v20 = vpop.eup %3964 }
 0x56c   :  { %v3967_v21 = vpop.eup %3966 }
 0x56d   :  { %v3969_v45 = vpop.eup %3968  ;;  %v1880_v48 = vmul.f32 %v3967_v21, %v3965_v20 }
 0x56e   :  { %v1879_v47 = vmul.f32 %v3969_v45, %v4867_v17  ;;  %v3971_v50 = vpop.eup %3970 }
 0x570   :  { %v4974_v49 = vadd.f32 %v1880_v48, %v1879_v47 }
 0x572   :  { %3972 = vtanh.f32 %v4974_v49 }
 0x57c   :  { %v3973_v51 = vpop.eup %3972 }
 0x57d   :  { %v1883_v52 = vmul.f32 %v3973_v51, %v3971_v50 }
 0x57f   :  { %1884 = vst [vmem:[#allocation12 + $0x3] sm:$0x1] %v1883_v52  ;;  %v1887_v53 = vpack.c.bf16 %v1883_v52, %v1883_v52 }
 0x581   :  { %2113 = vmatmul.mubr.bf16.vlgmr.msra.gmra.mrb[20].mxu0 %v1887_v53  ;;  %2154 = vmatmul.mubr.bf16.vlgmr.msra.gmra.mrb[20].mxu1 %v1887_v53 }
 0x582   :  { %2420 = vmatpush1.bf16.msra.mxu0 %v4876_v35  ;;  %2461 = vmatpush1.bf16.msra.mxu1 %v4878_v23 }
 0x583   :  { %2421 = vmatprep.subr.bf16.mxu0 %v4886_v25  ;;  %2462 = vmatprep.subr.bf16.mxu1 %v4890_v27 }
 0x584   :  { %2451 = vmatprep.mubr.bf16.mxu0 %v4389_v0  ;;  %2492 = vmatprep.mubr.bf16.mxu1 %v4389_v0 }
 0x586   :  { %2422 = vmatpush1.bf16.msra.mxu0 %v4884_v24  ;;  %2463 = vmatpush1.bf16.msra.mxu1 %v4888_v26 }
 0x587   :  { %2423 = vmatprep.subr.bf16.mxu0 %v4892_v28  ;;  %2464 = vmatprep.subr.bf16.mxu1 %v4895_v29 }
 0x58a   :  { %2424 = vmatpush1.bf16.msra.mxu0 %v4900_v31  ;;  %2465 = vmatpush1.bf16.msra.mxu1 %v4902_v32 }
 0x58b   :  { %2425 = vmatprep.subr.bf16.mxu0 %v4906_v33  ;;  %2466 = vmatprep.subr.bf16.mxu1 %v4908_v4 }
 0x58e   :  { %2426 = vmatpush1.bf16.msra.mxu0 %v4912_v6  ;;  %2467 = vmatpush1.bf16.msra.mxu1 %v4914_v7 }
 0x58f   :  { %2427 = vmatprep.subr.bf16.mxu0 %v4918_v8  ;;  %2468 = vmatprep.subr.bf16.mxu1 %v4920_v9 }
 0x592   :  { %2428 = vmatpush1.bf16.msra.mxu0 %v4924_v10  ;;  %2469 = vmatpush1.bf16.msra.mxu1 %v4926_v11 }
 0x593   :  { %2429 = vmatprep.subr.bf16.mxu0 %v4930_v12  ;;  %2470 = vmatprep.subr.bf16.mxu1 %v4932_v13 }
 0x596   :  { %2430 = vmatpush1.bf16.msra.mxu0 %v4936_v14  ;;  %2471 = vmatpush1.bf16.msra.mxu1 %v4938_v15 }
 0x597   :  { %2431 = vmatprep.subr.bf16.mxu0 %v4942_v37  ;;  %2472 = vmatprep.subr.bf16.mxu1 %v4944_v38 }
 0x59a   :  { %2432 = vmatpush1.bf16.msra.mxu0 %v4948_v39  ;;  %2473 = vmatpush1.bf16.msra.mxu1 %v4950_v40 }
 0x59b   :  { %2433 = vmatprep.subr.bf16.mxu0 %v4954_v41  ;;  %2474 = vmatprep.subr.bf16.mxu1 %v4956_v42 }
 0x59e   :  { %2434 = vmatpush1.bf16.msra.mxu0 %v4960_v43  ;;  %2475 = vmatpush1.bf16.msra.mxu1 %v4962_v44 }
 0x59f   :  { %2758 = vmatprep.subr.bf16.mxu0 %v4872_v34  ;;  %2799 = vmatprep.subr.bf16.mxu1 %v4874_v22 }
 0x654   :  { %v2114_v17 = vpop.f32.mrb[20].mxu0  ;;  %v2155_v54 = vpop.f32.mrb[20].mxu1 }
 0x655   :  { %v2116_v55 = vpop.f32.mrb[21].mxu0  ;;  %v2157_v56 = vpop.f32.mrb[21].mxu1 }
 0x656   :  { %v2166_v57 = vcombine.low %v2114_v17, %v2116_v55  ;;  %v2167_v58 = vcombine.low %v2155_v54, %v2157_v56  ;;  %v2118_v59 = vpop.f32.mrb[22].mxu0  ;;  %v2159_v60 = vpop.f32.mrb[22].mxu1 }
 0x657   :  { %v2119_v61 = vpop.f32.mrb[23].mxu0  ;;  %v2160_v62 = vpop.f32.mrb[23].mxu1 }
 0x658   :  { %v2174_v63 = vrot.slane %v2166_v57, %v4782_v30  ;;  %v2181_v1 = vrot.slane %v2167_v58, %v4782_v30 }
 0x65a   :  { %v2182_v2 = vcombine.low %v2174_v63, %v2181_v1 }
 0x65c   :  { %v2189_v3 = vrot.slane %v2182_v2, %v4782_v30 }
 0x65e   :  { %v2191_v5 = vadd.f32 %v2189_v3, %v1886_v36 }
 0x660   :  { %v3616_v16 = vmul.f32 -1.442695, %v2191_v5  ;;  %v2199_v18 = vrot.slane %v2191_v5, 1  ;;  %v2210_v20 = vrot.slane %v2191_v5, 3  ;;  %v2207_v46 = vrot.slane %v2191_v5, 2 }
 0x662   :  { %3974 = vpow2.f32 %v3616_v16  ;;  %v3617_v19 = vmul.f32 -1.442695, %v2199_v18  ;;  %v3618_v21 = vmul.f32 -1.442695, %v2210_v20 }
 0x664   :  { %3976 = vpow2.f32 %v3617_v19 }
 0x665   :  { %3978 = vpow2.f32 %v3618_v21 }
 0x66c   :  { %v3975_v45 = vpop.eup %3974 }
 0x66d   :  { %v2195_v47 = vadd.f32 1.0, %v3975_v45 }
 0x66e   :  { %v3977_v48 = vpop.eup %3976 }
 0x66f   :  { %3980 = vrcp.f32 %v2195_v47  ;;  %v2204_v50 = vadd.f32 1.0, %v3977_v48  ;;  %v3979_v51 = vpop.eup %3978 }
 0x670   :  { %3982 = vtanh.f32 %v2207_v46  ;;  %v2215_v54 = vadd.f32 1.0, %v3979_v51 }
 0x671   :  { %3984 = vrcp.f32 %v2204_v50 }
 0x672   :  { %3986 = vrcp.f32 %v2215_v54 }
 0x679   :  { %v3981_v52 = vpop.eup %3980 }
 0x67a   :  { %v3983_v53 = vpop.eup %3982 }
 0x67b   :  { %v3985_v17 = vpop.eup %3984  ;;  %v2219_v56 = vmul.f32 %v3983_v53, %v3981_v52 }
 0x67c   :  { %v2218_v55 = vmul.f32 %v3985_v17, %v4974_v49  ;;  %v3987_v58 = vpop.eup %3986 }
 0x67e   :  { %v5015_v57 = vadd.f32 %v2219_v56, %v2218_v55 }
 0x680   :  { %3988 = vtanh.f32 %v5015_v57 }
 0x68a   :  { %v3989_v59 = vpop.eup %3988 }
 0x68b   :  { %v2222_v60 = vmul.f32 %v3989_v59, %v3987_v58 }
 0x68d   :  { %2223 = vst [vmem:[#allocation12 + $0x4] sm:$0x1] %v2222_v60  ;;  %v2226_v61 = vpack.c.bf16 %v2222_v60, %v2222_v60 }
 0x68f   :  { %2452 = vmatmul.mubr.bf16.vlgmr.msra.gmra.mrb[24].mxu0 %v2226_v61  ;;  %2493 = vmatmul.mubr.bf16.vlgmr.msra.gmra.mrb[24].mxu1 %v2226_v61 }
 0x690   :  { %2759 = vmatpush1.bf16.msra.mxu0 %v4876_v35  ;;  %2800 = vmatpush1.bf16.msra.mxu1 %v4878_v23 }
 0x691   :  { %2760 = vmatprep.subr.bf16.mxu0 %v4886_v25  ;;  %2801 = vmatprep.subr.bf16.mxu1 %v4890_v27 }
 0x692   :  { %2790 = vmatprep.mubr.bf16.mxu0 %v4389_v0  ;;  %2831 = vmatprep.mubr.bf16.mxu1 %v4389_v0 }
 0x694   :  { %2761 = vmatpush1.bf16.msra.mxu0 %v4884_v24  ;;  %2802 = vmatpush1.bf16.msra.mxu1 %v4888_v26 }
 0x695   :  { %2762 = vmatprep.subr.bf16.mxu0 %v4892_v28  ;;  %2803 = vmatprep.subr.bf16.mxu1 %v4895_v29 }
 0x698   :  { %2763 = vmatpush1.bf16.msra.mxu0 %v4900_v31  ;;  %2804 = vmatpush1.bf16.msra.mxu1 %v4902_v32 }
 0x699   :  { %2764 = vmatprep.subr.bf16.mxu0 %v4906_v33  ;;  %2805 = vmatprep.subr.bf16.mxu1 %v4908_v4 }
 0x69c   :  { %2765 = vmatpush1.bf16.msra.mxu0 %v4912_v6  ;;  %2806 = vmatpush1.bf16.msra.mxu1 %v4914_v7 }
 0x69d   :  { %2766 = vmatprep.subr.bf16.mxu0 %v4918_v8  ;;  %2807 = vmatprep.subr.bf16.mxu1 %v4920_v9 }
 0x6a0   :  { %2767 = vmatpush1.bf16.msra.mxu0 %v4924_v10  ;;  %2808 = vmatpush1.bf16.msra.mxu1 %v4926_v11 }
 0x6a1   :  { %2768 = vmatprep.subr.bf16.mxu0 %v4930_v12  ;;  %2809 = vmatprep.subr.bf16.mxu1 %v4932_v13 }
 0x6a4   :  { %2769 = vmatpush1.bf16.msra.mxu0 %v4936_v14  ;;  %2810 = vmatpush1.bf16.msra.mxu1 %v4938_v15 }
 0x6a5   :  { %2770 = vmatprep.subr.bf16.mxu0 %v4942_v37  ;;  %2811 = vmatprep.subr.bf16.mxu1 %v4944_v38 }
 0x6a8   :  { %2771 = vmatpush1.bf16.msra.mxu0 %v4948_v39  ;;  %2812 = vmatpush1.bf16.msra.mxu1 %v4950_v40 }
 0x6a9   :  { %2772 = vmatprep.subr.bf16.mxu0 %v4954_v41  ;;  %2813 = vmatprep.subr.bf16.mxu1 %v4956_v42 }
 0x6ac   :  { %2773 = vmatpush1.bf16.msra.mxu0 %v4960_v43  ;;  %2814 = vmatpush1.bf16.msra.mxu1 %v4962_v44 }
 0x6ad   :  { %3097 = vmatprep.subr.bf16.mxu0 %v4872_v34  ;;  %3138 = vmatprep.subr.bf16.mxu1 %v4874_v22  ;;  %v2225_v34 = vld [vmem:[#allocation3 + $0x5] ss:$8 sm:$0xf] }
 0x762   :  { %v2453_v49 = vpop.f32.mrb[24].mxu0  ;;  %v2494_v62 = vpop.f32.mrb[24].mxu1 }
 0x763   :  { %v2455_v63 = vpop.f32.mrb[25].mxu0  ;;  %v2496_v1 = vpop.f32.mrb[25].mxu1 }
 0x764   :  { %v2505_v2 = vcombine.low %v2453_v49, %v2455_v63  ;;  %v2506_v3 = vcombine.low %v2494_v62, %v2496_v1  ;;  %v2457_v36 = vpop.f32.mrb[26].mxu0  ;;  %v2498_v5 = vpop.f32.mrb[26].mxu1 }
 0x765   :  { %v2458_v16 = vpop.f32.mrb[27].mxu0  ;;  %v2499_v18 = vpop.f32.mrb[27].mxu1 }
 0x766   :  { %v2513_v19 = vrot.slane %v2505_v2, %v4782_v30  ;;  %v2520_v20 = vrot.slane %v2506_v3, %v4782_v30 }
 0x768   :  { %v2521_v21 = vcombine.low %v2513_v19, %v2520_v20 }
 0x76a   :  { %v2528_v45 = vrot.slane %v2521_v21, %v4782_v30 }
 0x76c   :  { %v2530_v46 = vadd.f32 %v2528_v45, %v2225_v34 }
 0x76e   :  { %v3651_v22 = vmul.f32 -1.442695, %v2530_v46  ;;  %v2538_v47 = vrot.slane %v2530_v46, 1  ;;  %v2549_v50 = vrot.slane %v2530_v46, 3  ;;  %v2546_v53 = vrot.slane %v2530_v46, 2 }
 0x770   :  { %3990 = vpow2.f32 %v3651_v22  ;;  %v3652_v48 = vmul.f32 -1.442695, %v2538_v47  ;;  %v3653_v51 = vmul.f32 -1.442695, %v2549_v50 }
 0x772   :  { %3992 = vpow2.f32 %v3652_v48 }
 0x773   :  { %3994 = vpow2.f32 %v3653_v51 }
 0x77a   :  { %v3991_v52 = vpop.eup %3990 }
 0x77b   :  { %v2534_v17 = vadd.f32 1.0, %v3991_v52 }
 0x77c   :  { %v3993_v54 = vpop.eup %3992 }
 0x77d   :  { %3996 = vrcp.f32 %v2534_v17  ;;  %v2543_v55 = vadd.f32 1.0, %v3993_v54  ;;  %v3995_v56 = vpop.eup %3994 }
 0x77e   :  { %3998 = vtanh.f32 %v2546_v53  ;;  %v2554_v61 = vadd.f32 1.0, %v3995_v56 }
 0x77f   :  { %4000 = vrcp.f32 %v2543_v55 }
 0x780   :  { %4002 = vrcp.f32 %v2554_v61 }
 0x787   :  { %v3997_v58 = vpop.eup %3996 }
 0x788   :  { %v3999_v59 = vpop.eup %3998 }
 0x789   :  { %v4001_v60 = vpop.eup %4000  ;;  %v2558_v62 = vmul.f32 %v3999_v59, %v3997_v58  ;;  %v2903_v58 = vld [vmem:[#allocation3 + $0x7] ss:$8 sm:$0xf] }
 0x78a   :  { %v2557_v49 = vmul.f32 %v4001_v60, %v5015_v57  ;;  %v4003_v1 = vpop.eup %4002 }
 0x78c   :  { %v5056_v63 = vadd.f32 %v2558_v62, %v2557_v49 }
 0x78e   :  { %4004 = vtanh.f32 %v5056_v63 }
 0x798   :  { %v4005_v2 = vpop.eup %4004 }
 0x799   :  { %v2561_v3 = vmul.f32 %v4005_v2, %v4003_v1 }
 0x79b   :  { %2562 = vst [vmem:[#allocation12 + $0x5] sm:$0x1] %v2561_v3  ;;  %v2565_v36 = vpack.c.bf16 %v2561_v3, %v2561_v3 }
 0x79d   :  { %2791 = vmatmul.mubr.bf16.vlgmr.msra.gmra.mrb[28].mxu0 %v2565_v36  ;;  %2832 = vmatmul.mubr.bf16.vlgmr.msra.gmra.mrb[28].mxu1 %v2565_v36 }
 0x79e   :  { %3098 = vmatpush1.bf16.msra.mxu0 %v4876_v35  ;;  %3139 = vmatpush1.bf16.msra.mxu1 %v4878_v23 }
 0x79f   :  { %3099 = vmatprep.subr.bf16.mxu0 %v4886_v25  ;;  %3140 = vmatprep.subr.bf16.mxu1 %v4890_v27 }
 0x7a0   :  { %3129 = vmatprep.mubr.bf16.mxu0 %v4389_v0  ;;  %3170 = vmatprep.mubr.bf16.mxu1 %v4389_v0 }
 0x7a2   :  { %3100 = vmatpush1.bf16.msra.mxu0 %v4884_v24  ;;  %3141 = vmatpush1.bf16.msra.mxu1 %v4888_v26 }
 0x7a3   :  { %3101 = vmatprep.subr.bf16.mxu0 %v4892_v28  ;;  %3142 = vmatprep.subr.bf16.mxu1 %v4895_v29 }
 0x7a6   :  { %3102 = vmatpush1.bf16.msra.mxu0 %v4900_v31  ;;  %3143 = vmatpush1.bf16.msra.mxu1 %v4902_v32 }
 0x7a7   :  { %3103 = vmatprep.subr.bf16.mxu0 %v4906_v33  ;;  %3144 = vmatprep.subr.bf16.mxu1 %v4908_v4 }
 0x7aa   :  { %3104 = vmatpush1.bf16.msra.mxu0 %v4912_v6  ;;  %3145 = vmatpush1.bf16.msra.mxu1 %v4914_v7  ;;  %v2564_v7 = vld [vmem:[#allocation3 + $0x6] ss:$8 sm:$0xf] }
 0x7ab   :  { %3105 = vmatprep.subr.bf16.mxu0 %v4918_v8  ;;  %3146 = vmatprep.subr.bf16.mxu1 %v4920_v9 }
 0x7ae   :  { %3106 = vmatpush1.bf16.msra.mxu0 %v4924_v10  ;;  %3147 = vmatpush1.bf16.msra.mxu1 %v4926_v11 }
 0x7af   :  { %3107 = vmatprep.subr.bf16.mxu0 %v4930_v12  ;;  %3148 = vmatprep.subr.bf16.mxu1 %v4932_v13 }
 0x7b2   :  { %3108 = vmatpush1.bf16.msra.mxu0 %v4936_v14  ;;  %3149 = vmatpush1.bf16.msra.mxu1 %v4938_v15 }
 0x7b3   :  { %3109 = vmatprep.subr.bf16.mxu0 %v4942_v37  ;;  %3150 = vmatprep.subr.bf16.mxu1 %v4944_v38 }
 0x7b6   :  { %3110 = vmatpush1.bf16.msra.mxu0 %v4948_v39  ;;  %3151 = vmatpush1.bf16.msra.mxu1 %v4950_v40 }
 0x7b7   :  { %3111 = vmatprep.subr.bf16.mxu0 %v4954_v41  ;;  %3152 = vmatprep.subr.bf16.mxu1 %v4956_v42 }
 0x7ba   :  { %3112 = vmatpush1.bf16.msra.mxu0 %v4960_v43  ;;  %3153 = vmatpush1.bf16.msra.mxu1 %v4962_v44 }
 0x870   :  { %v2792_v0 = vpop.f32.mrb[28].mxu0  ;;  %v2833_v35 = vpop.f32.mrb[28].mxu1 }
 0x871   :  { %v2794_v23 = vpop.f32.mrb[29].mxu0  ;;  %v2835_v24 = vpop.f32.mrb[29].mxu1 }
 0x872   :  { %v2844_v25 = vcombine.low %v2792_v0, %v2794_v23  ;;  %v2845_v26 = vcombine.low %v2833_v35, %v2835_v24  ;;  %v2796_v27 = vpop.f32.mrb[30].mxu0  ;;  %v2837_v28 = vpop.f32.mrb[30].mxu1 }
 0x873   :  { %v2797_v29 = vpop.f32.mrb[31].mxu0  ;;  %v2838_v31 = vpop.f32.mrb[31].mxu1 }
 0x874   :  { %v2852_v32 = vrot.slane %v2844_v25, %v4782_v30  ;;  %v2859_v33 = vrot.slane %v2845_v26, %v4782_v30 }
 0x876   :  { %v2860_v4 = vcombine.low %v2852_v32, %v2859_v33 }
 0x878   :  { %v2867_v6 = vrot.slane %v2860_v4, %v4782_v30 }
 0x87a   :  { %v2869_v8 = vadd.f32 %v2867_v6, %v2564_v7 }
 0x87c   :  { %v3686_v9 = vmul.f32 -1.442695, %v2869_v8  ;;  %v2877_v10 = vrot.slane %v2869_v8, 1  ;;  %v2888_v12 = vrot.slane %v2869_v8, 3  ;;  %v2885_v15 = vrot.slane %v2869_v8, 2 }
 0x87e   :  { %4006 = vpow2.f32 %v3686_v9  ;;  %v3687_v11 = vmul.f32 -1.442695, %v2877_v10  ;;  %v3688_v13 = vmul.f32 -1.442695, %v2888_v12 }
 0x880   :  { %4008 = vpow2.f32 %v3687_v11 }
 0x881   :  { %4010 = vpow2.f32 %v3688_v13 }
 0x888   :  { %v4007_v14 = vpop.eup %4006 }
 0x889   :  { %v2873_v37 = vadd.f32 1.0, %v4007_v14 }
 0x88a   :  { %v4009_v38 = vpop.eup %4008 }
 0x88b   :  { %4012 = vrcp.f32 %v2873_v37  ;;  %v2882_v39 = vadd.f32 1.0, %v4009_v38  ;;  %v4011_v40 = vpop.eup %4010 }
 0x88c   :  { %4014 = vtanh.f32 %v2885_v15  ;;  %v2893_v44 = vadd.f32 1.0, %v4011_v40 }
 0x88d   :  { %4016 = vrcp.f32 %v2882_v39 }
 0x88e   :  { %4018 = vrcp.f32 %v2893_v44 }
 0x895   :  { %v4013_v41 = vpop.eup %4012 }
 0x896   :  { %v4015_v42 = vpop.eup %4014 }
 0x897   :  { %v4017_v43 = vpop.eup %4016  ;;  %v2897_v5 = vmul.f32 %v4015_v42, %v4013_v41 }
 0x898   :  { %v2896_v57 = vmul.f32 %v4017_v43, %v5056_v63  ;;  %v4019_v18 = vpop.eup %4018 }
 0x89a   :  { %v2898_v16 = vadd.f32 %v2897_v5, %v2896_v57 }
 0x89c   :  { %4020 = vtanh.f32 %v2898_v16 }
 0x8a6   :  { %v4021_v19 = vpop.eup %4020 }
 0x8a7   :  { %v2900_v20 = vmul.f32 %v4021_v19, %v4019_v18 }
 0x8a9   :  { %2901 = vst [vmem:[#allocation12 + $0x6] sm:$0x1] %v2900_v20  ;;  %v2904_v21 = vpack.c.bf16 %v2900_v20, %v2900_v20 }
 0x8ab   :  { %3130 = vmatmul.mubr.bf16.vlgmr.msra.gmra.mrb[32].mxu0 %v2904_v21  ;;  %3171 = vmatmul.mubr.bf16.vlgmr.msra.gmra.mrb[32].mxu1 %v2904_v21 }
 0x97e   :  { %v3131_v45 = vpop.f32.mrb[32].mxu0  ;;  %v3172_v34 = vpop.f32.mrb[32].mxu1 }
 0x97f   :  { %v3133_v46 = vpop.f32.mrb[33].mxu0  ;;  %v3174_v22 = vpop.f32.mrb[33].mxu1 }
 0x980   :  { %v3183_v47 = vcombine.low %v3131_v45, %v3133_v46  ;;  %v3184_v48 = vcombine.low %v3172_v34, %v3174_v22  ;;  %v3135_v50 = vpop.f32.mrb[34].mxu0  ;;  %v3176_v51 = vpop.f32.mrb[34].mxu1 }
 0x981   :  { %v3136_v52 = vpop.f32.mrb[35].mxu0  ;;  %v3177_v53 = vpop.f32.mrb[35].mxu1 }
 0x982   :  { %v3191_v17 = vrot.slane %v3183_v47, %v4782_v30  ;;  %v3198_v54 = vrot.slane %v3184_v48, %v4782_v30 }
 0x984   :  { %v3199_v55 = vcombine.low %v3191_v17, %v3198_v54 }
 0x986   :  { %v3206_v56 = vrot.slane %v3199_v55, %v4782_v30 }
 0x988   :  { %v3208_v59 = vadd.f32 %v3206_v56, %v2903_v58 }
 0x98a   :  { %v3721_v60 = vmul.f32 -1.442695, %v3208_v59  ;;  %v3216_v61 = vrot.slane %v3208_v59, 1  ;;  %v3227_v62 = vrot.slane %v3208_v59, 3  ;;  %v3224_v2 = vrot.slane %v3208_v59, 2 }
 0x98c   :  { %4022 = vpow2.f32 %v3721_v60  ;;  %v3722_v49 = vmul.f32 -1.442695, %v3216_v61  ;;  %v3723_v63 = vmul.f32 -1.442695, %v3227_v62 }
 0x98e   :  { %4024 = vpow2.f32 %v3722_v49 }
 0x98f   :  { %4026 = vpow2.f32 %v3723_v63 }
 0x996   :  { %v4023_v1 = vpop.eup %4022 }
 0x997   :  { %v3212_v3 = vadd.f32 1.0, %v4023_v1 }
 0x998   :  { %v4025_v36 = vpop.eup %4024 }
 0x999   :  { %4028 = vrcp.f32 %v3212_v3  ;;  %v3221_v0 = vadd.f32 1.0, %v4025_v36  ;;  %v4027_v35 = vpop.eup %4026 }
 0x99a   :  { %4030 = vtanh.f32 %v3224_v2  ;;  %v3232_v25 = vadd.f32 1.0, %v4027_v35 }
 0x99b   :  { %4032 = vrcp.f32 %v3221_v0 }
 0x99c   :  { %4034 = vrcp.f32 %v3232_v25 }
 0x9a3   :  { %v4029_v30 = vpop.eup %4028 }
 0x9a4   :  { %v4031_v23 = vpop.eup %4030 }
 0x9a5   :  { %v4033_v24 = vpop.eup %4032  ;;  %v3236_v27 = vmul.f32 %v4031_v23, %v4029_v30 }
 0x9a6   :  { %v3235_v26 = vmul.f32 %v4033_v24, %v2898_v16  ;;  %v4035_v29 = vpop.eup %4034 }
 0x9a8   :  { %v3237_v28 = vadd.f32 %v3236_v27, %v3235_v26 }
 0x9aa   :  { %4036 = vtanh.f32 %v3237_v28  ;;  %3242 = vst [vmem:[#allocation15] sm:$0x1] %v3237_v28 }
 0x9b4   :  { %v4037_v31 = vpop.eup %4036 }
 0x9b5   :  { %v3239_v32 = vmul.f32 %v4037_v31, %v4035_v29 }
 0x9b7   :  { %3240 = vst [vmem:[#allocation12 + $0x7] sm:$0x1] %v3239_v32  ;;  %3241 = vst [vmem:[#allocation13] sm:$0x1] %v3239_v32 }
 0x9b8   :  { %4295 = shalt.err (!%p4292_p10)
}
 0x9b9   :  { %s4296_s27 = scalar_lea.hbm %s5155_s6, 16 }
 0x9ba   :  { %p4297_p13 = scmp.ne.s32.totalorder %s5155_s6, %s4296_s27  ;;  %p4300_p9 = scmp.lt.u32.totalorder %s4296_s27, %s5155_s6 }
 0x9bc   :  { %p4302_p11 = pnand %p4300_p9, %p4297_p13 }
 0x9be   :  { %4305 = shalt.err (!%p4302_p11)
}
 0x9bf   :  { %3262 = dma.vmem_to_hbm [thread:$0]  %s3260_s28, 16, %s5155_s6, [#allocation14]  }
 0x9c0   :  { %s4306_s30 = scalar_lea.vmem %s5098_s23, 128  ;;  %p4311_p8 = scmp.lt.s32.totalorder %s5098_s23, %s5098_s23 }
 0x9c1   :  { %p4307_p1 = scmp.ne.s32.totalorder %s5098_s23, %s4306_s30  ;;  %p4312_p2 = scmp.lt.s32.totalorder %s4306_s30, %s4306_s30 }
 0x9c3   :  { %p4313_p3 = por %p4312_p2, %p4311_p8 }
 0x9c5   :  { %p4314_p4 = pnand %p4313_p3, %p4307_p1 }
 0x9c7   :  { %4317 = shalt.err (!%p4314_p4)
}
 0x9c8   :  { %s4318_s13 = scalar_lea.hbm %s5154_s5, 128 }
 0x9c9   :  { %p4319_p5 = scmp.ne.s32.totalorder %s5154_s5, %s4318_s13  ;;  %p4322_p6 = scmp.lt.u32.totalorder %s4318_s13, %s5154_s5 }
 0x9cb   :  { %p4324_p7 = pnand %p4322_p6, %p4319_p5 }
 0x9cd   :  { %4327 = shalt.err (!%p4324_p7)
}
 0x9ce   :  { %3252 = dma.vmem_to_hbm [thread:$0]  %s5098_s23, 128, %s5154_s5, [#allocation9]  }
 0x9cf   :  { %s4328_s1 = scalar_lea.vmem %s5100_s24, 16  ;;  %s4332_s14 = scalar_lea.vmem %s5100_s24, 32 }
 0x9d0   :  { %p4329_p0 = scmp.ne.s32.totalorder %s5100_s24, %s4328_s1  ;;  %p4333_p12 = scmp.lt.s32.totalorder %s5100_s24, %s5100_s24 }
 0x9d1   :  { %p4334_p10 = scmp.lt.s32.totalorder %s4332_s14, %s4328_s1 }
 0x9d3   :  { %p4335_p13 = por %p4334_p10, %p4333_p12 }
 0x9d5   :  { %p4336_p9 = pnand %p4335_p13, %p4329_p0 }
 0x9d7   :  { %4339 = shalt.err (!%p4336_p9)
}
 0x9d8   :  { %s4340_s9 = scalar_lea.hbm %s5156_s7, 16 }
 0x9d9   :  { %p4341_p11 = scmp.ne.s32.totalorder %s5156_s7, %s4340_s9  ;;  %p4344_p1 = scmp.lt.u32.totalorder %s4340_s9, %s5156_s7 }
 0x9db   :  { %p4346_p8 = pnand %p4344_p1, %p4341_p11 }
 0x9dd   :  { %4349 = shalt.err (!%p4346_p8)
}
 0x9de   :  { %3272 = dma.vmem_to_hbm [thread:$0]  %s5100_s24, 16, %s5156_s7, [#allocation14]  }
 0x9df   :  { %4372 = dma.done.wait [#allocation9], 128  }
 0x9e0   :  { %4373 = vsyncadd [#allocation9], 4294967168 }
 0x9e1   :  { %4374 = dma.done.wait [#allocation14], 32  }
 0x9e2   :  { %4375 = vsyncadd [#allocation14], 4294967264 }
 0x9e3   :  { %3282 = vsyncpa [#allocation8], 1 }
 0x9e4   :  { %3283 = vsyncpa [#allocation11], 1 }
 0x9e5   :  { %3284 = vsyncpa [#allocation9], 1 }
 0x9e6   :  { %3285 = vsyncpa [#allocation14], 1 }
 0x9e7   :  { %3286 = vsyncmov [#allocation4] }
 0x9ea   :  { %s3287_s26 = vpop.sfrf %3286 }
 0x9eb   :  { %p3724_p2 = scmp.ne.s32.totalorder %s3287_s26, 0 }
 0x9ed   :  { %3291 = shalt.err (%p3724_p2)  }
 0x9ee   :  { %3293 = vsyncmov [#allocation4 + $0x1] }
 0x9f1   :  { %s3294_s27 = vpop.sfrf %3293 }
 0x9f2   :  { %p3725_p3 = scmp.ne.s32.totalorder %s3294_s27, 0 }
 0x9f4   :  { %3298 = shalt.err (%p3725_p3)  }
 0x9f5   :  { %3300 = vsyncmov [#allocation4 + $0x2] }
 0x9f8   :  { %s3301_s29 = vpop.sfrf %3300 }
 0x9f9   :  { %p3726_p4 = scmp.ne.s32.totalorder %s3301_s29, 0 }
 0x9fb   :  { %3305 = shalt.err (%p3726_p4)  }
 0x9fc   :  { %3307 = vsyncmov [#allocation4 + $0x3] }
 0x9ff   :  { %s3308_s7 = vpop.sfrf %3307 }
 0xa00   :  { %p3727_p5 = scmp.ne.s32.totalorder %s3308_s7, 0 }
 0xa02   :  { %3312 = shalt.err (%p3727_p5)  }
 0xa03   :  { %3314 = vsyncmov [#allocation4 + $0x4] }
 0xa06   :  { %s3315_s24 = vpop.sfrf %3314 }
 0xa07   :  { %p3728_p6 = scmp.ne.s32.totalorder %s3315_s24, 0 }
 0xa09   :  { %3319 = shalt.err (%p3728_p6)  }
 0xa0a   :  { %3321 = vsyncmov [#allocation4 + $0x5] }
 0xa0d   :  { %s3322_s17 = vpop.sfrf %3321 }
 0xa0e   :  { %p3729_p7 = scmp.ne.s32.totalorder %s3322_s17, 0 }
 0xa10   :  { %3326 = shalt.err (%p3729_p7)  }
 0xa11   :  { %3328 = vsyncmov [#allocation4 + $0x6] }
 0xa14   :  { %s3329_s18 = vpop.sfrf %3328 }
 0xa15   :  { %p3730_p0 = scmp.ne.s32.totalorder %s3329_s18, 0 }
 0xa17   :  { %3333 = shalt.err (%p3730_p0)  }
 0xa18   :  { %3335 = vsyncmov [#allocation4 + $0x7] }
 0xa1b   :  { %s3336_s21 = vpop.sfrf %3335 }
 0xa1c   :  { %p3731_p12 = scmp.ne.s32.totalorder %s3336_s21, 0 }
 0xa1e   :  { %3340 = shalt.err (%p3731_p12)  }

</bundles_post_ra>
